<compile_context>
chip_gen: v7x
topology: tpu7x:2x2x1
jax: 0.10.0
libtpu: 0.0.40
codegen_flags: <defaults>
</compile_context>

<pallas_src>
import jax
import jax.numpy as jnp
from jax.experimental import pallas as pl
from jax.experimental.pallas import tpu as pltpu


def linear_kernel(x_ref, wt_ref, b_ref, o_ref):
    # x_ref:  [TB, K]  (VMEM, streamed batch tile)
    # wt_ref: [K,  N]  (VMEM, resident across the grid)
    # b_ref:  [1,  N]  (VMEM, resident)
    # o_ref:  [TB, N]
    acc = jnp.dot(x_ref[...], wt_ref[...], preferred_element_type=jnp.float32)
    o_ref[...] = (acc + b_ref[...]).astype(o_ref.dtype)


def _choose_tb(batch, tb_default):
    """Sublane-aligned batch tile; keeps >=2 grid steps so v7x's 2 TCs share work."""
    if batch <= 8:
        return batch                      # single full-extent block (exempt from the 8-rule)
    tb = min(tb_default, batch)
    if batch <= 2 * tb:
        tb = pl.cdiv(batch, 2)            # split into ~2 tiles for 2-TC sharding
    tb = max(8, ((tb + 7) // 8) * 8)      # multiple of 8 (sublane alignment)
    return min(tb, batch)


def binary_classifier_forward(x, weight, bias, *, tb=512):
    """x: [B, K] f32, weight: [N, K] f32 (PyTorch nn.Linear layout), bias: [N] f32."""
    B, K = x.shape
    N, K2 = weight.shape
    assert K == K2 and bias.shape == (N,)

    w_t = weight.T                        # one-time tiny XLA transpose -> [K, N]
    b_row = bias.reshape(1, N)

    tb = _choose_tb(B, tb)
    grid = (pl.cdiv(B, tb),)              # partial last tile: rows independent,
                                          # masked writeback -> correct

    return pl.pallas_call(
        linear_kernel,
        out_shape=jax.ShapeDtypeStruct((B, N), x.dtype),
        grid_spec=pltpu.PrefetchScalarGridSpec(
            num_scalar_prefetch=0,
            grid=grid,
            in_specs=[
                pl.BlockSpec((tb, K), lambda i: (i, 0)),   # x batch tile (streamed)
                pl.BlockSpec((K, N), lambda i: (0, 0)),    # weight^T (resident)
                pl.BlockSpec((1, N), lambda i: (0, 0)),    # bias row (resident)
            ],
            out_specs=pl.BlockSpec((tb, N), lambda i: (i, 0)),
        ),
        compiler_params=pltpu.CompilerParams(
            # batch tiles are independent -> shard across v7x's 2 TensorCores
            dimension_semantics=("parallel",),
            # 2 x-buffers (16 MiB @ tb=512) + weight/bias/out + headroom;
            # fits v7x's 64 MiB VMEM and overrides v5e's 16 MiB scoped default.
            vmem_limit_bytes=32 * 1024 * 1024,
        ),
    )(x, w_t, b_row)


if __name__ == "__main__":
    INPUT_SIZE = 4096   # matches module default
    OUT_FEATURES = 2
    BATCH = 2

    key = jax.random.PRNGKey(0)
    kx, kw, kb = jax.random.split(key, 3)

    # Deterministic synthetic parameters (PyTorch nn.Linear shapes: W [2, 4096], b [2])
    bound = 1.0 / (INPUT_SIZE ** 0.5)
    weight = jax.random.uniform(kw, (OUT_FEATURES, INPUT_SIZE),
                                jnp.float32, -bound, bound)
    bias = jax.random.uniform(kb, (OUT_FEATURES,), jnp.float32, -bound, bound)
    x = jax.random.normal(kx, (BATCH, INPUT_SIZE), jnp.float32)

    out = binary_classifier_forward(x, weight, bias)
    out = jax.block_until_ready(out)

    # Reference check against plain JAX
    ref = x @ weight.T + bias
    assert out.shape == (BATCH, OUT_FEATURES)
    assert jnp.allclose(out, ref, atol=2e-4, rtol=1e-4)

    print("KERNEL_OK")
</pallas_src>

<mosaic_0001>
module attributes {stable_mosaic.version = 11 : i64} {
  func.func @linear_kernel(%arg0: i32, %arg1: memref<2x4096xf32, #tpu.memory_space<vmem>>, %arg2: memref<4096x2xf32, #tpu.memory_space<vmem>>, %arg3: memref<1x2xf32, #tpu.memory_space<vmem>>, %arg4: memref<2x2xf32, #tpu.memory_space<vmem>>) attributes {dimension_semantics = [#tpu.dimension_semantics<parallel>], iteration_bounds = array<i64: 1>, scalar_prefetch = 0 : i64, scratch_operands = 0 : i64, tpu.core_type = #tpu.core_type<tc>, window_params = [{transform_indices = @transform_0, window_bounds = array<i64: 2, 4096>}, {pipeline_mode = #tpu.pipeline_mode<synchronous>, transform_indices = @transform_1, window_bounds = array<i64: 4096, 2>}, {pipeline_mode = #tpu.pipeline_mode<synchronous>, transform_indices = @transform_2, window_bounds = array<i64: 1, 2>}, {transform_indices = @transform_3, window_bounds = array<i64: 2, 2>}]} {
    %c0 = arith.constant 0 : index
    %c0_0 = arith.constant 0 : index
    %0 = vector.load %arg1[%c0, %c0_0] : memref<2x4096xf32, #tpu.memory_space<vmem>>, vector<2x4096xf32>
    %c0_1 = arith.constant 0 : index
    %c0_2 = arith.constant 0 : index
    %1 = vector.load %arg2[%c0_1, %c0_2] : memref<4096x2xf32, #tpu.memory_space<vmem>>, vector<4096x2xf32>
    %cst = arith.constant dense<0.000000e+00> : vector<2x2xf32>
    %2 = tpu.matmul %0, %1, %cst {dimension_numbers = #tpu.dot_dimension_numbers<[1], [0], [0], [1], [0, 0, 1, 1], [], []>} : vector<2x4096xf32>, vector<4096x2xf32>, vector<2x2xf32> -> vector<2x2xf32>
    %c0_3 = arith.constant 0 : index
    %c0_4 = arith.constant 0 : index
    %3 = vector.load %arg3[%c0_3, %c0_4] : memref<1x2xf32, #tpu.memory_space<vmem>>, vector<1x2xf32>
    %4 = vector.broadcast %3 : vector<1x2xf32> to vector<2x2xf32>
    %5 = arith.addf %2, %4 : vector<2x2xf32>
    %c0_5 = arith.constant 0 : index
    %c0_6 = arith.constant 0 : index
    %6 = vector.load %arg4[%c0_5, %c0_6] : memref<2x2xf32, #tpu.memory_space<vmem>>, vector<2x2xf32>
    tpu.vector_store %arg4[%c0_5, %c0_6], %5 {strides = array<i32>} : memref<2x2xf32, #tpu.memory_space<vmem>>, vector<2x2xf32>,
    return
  }
  func.func @transform_0(%arg0: i32) -> (i32, i32) {
    %c0_i32 = arith.constant 0 : i32
    %c0_i32_0 = arith.constant 0 : i32
    return %arg0, %c0_i32 : i32, i32
  }
  func.func @transform_1(%arg0: i32) -> (i32, i32) {
    %c0_i32 = arith.constant 0 : i32
    %c0_i32_0 = arith.constant 0 : i32
    %c0_i32_1 = arith.constant 0 : i32
    return %c0_i32, %c0_i32_0 : i32, i32
  }
  func.func @transform_2(%arg0: i32) -> (i32, i32) {
    %c0_i32 = arith.constant 0 : i32
    %c0_i32_0 = arith.constant 0 : i32
    %c0_i32_1 = arith.constant 0 : i32
    return %c0_i32, %c0_i32_0 : i32, i32
  }
  func.func @transform_3(%arg0: i32) -> (i32, i32) {
    %c0_i32 = arith.constant 0 : i32
    %c0_i32_0 = arith.constant 0 : i32
    return %arg0, %c0_i32 : i32, i32
  }
}

</mosaic_0001>

<bundles_post_ra>
// kernel: tpu_custom_call.1
= control target key start
LH: loop header
LB: loop body
LE: loop exit
PB: predicated region body
PF: predicated region fallthrough
CT: control target
= control target key end

     0   :  { %v2961_v47 = vmov 1983009808   ;;  %v554_v49 = vlaneseq  ;;  %s4646_s0 = inlined_call_operand.vmem [shape: f32[2,4096], index: 0, kind: input, shape index: {}]   ;;  %s4647_s1 = inlined_call_operand.vmem [shape: f32[4096,2], index: 1, kind: input, shape index: {}]   ;;  %s4648_s2 = inlined_call_operand.vmem [shape: f32[1,2], index: 2, kind: input, shape index: {}]   ;;  %s4649_s3 = inlined_call_operand.hbm [shape: f32[2,2], index: 3, kind: output, shape index: {}]  }
   0x1   :  { %v39_v0 = vld [vmem:[%s4647_s1 + $0x80] sm:$0xff]  ;;  %v40_v1 = vld [vmem:[%s4647_s1 + $0x88] sm:$0xff]  ;;  %v41_v11 = vld [vmem:[%s4647_s1 + $0x90] sm:$0xff]  ;;  %v552_v48 = vunpack.c.l.s4 %v2961_v47 }
   0x2   :  { %v23_v2 = vld [vmem:[%s4647_s1] sm:$0xff]  ;;  %v2415_v3 = vpack.c.bf16 %v40_v1, %v39_v0  ;;  %v24_v4 = vld [vmem:[%s4647_s1 + $0x8] sm:$0xff]  ;;  %v42_v13 = vld [vmem:[%s4647_s1 + $0x98] sm:$0xff]  ;;  %v555_v0 = vshrl.u32 %v554_v49, 7 }
   0x3   :  { %v71_v5 = vld [vmem:[%s4647_s1 + $0x180] sm:$0xff]  ;;  %v72_v6 = vld [vmem:[%s4647_s1 + $0x188] sm:$0xff]  ;;  %v2417_v7 = vpack.c.bf16 %v24_v4, %v23_v2  ;;  %v25_v14 = vld [vmem:[%s4647_s1 + $0x10] sm:$0xff]  ;;  %v2419_v16 = vpack.c.bf16 %v42_v13, %v41_v11  ;;  %v553_v63 = vunpack.c.0.s8 %v552_v48 }
   0x4   :  { %v2447_v8 = vpack.c.bf16 %v72_v6, %v71_v5  ;;  %v55_v9 = vld [vmem:[%s4647_s1 + $0x100] sm:$0xff]  ;;  %v56_v10 = vld [vmem:[%s4647_s1 + $0x108] sm:$0xff]  ;;  %2416 = vmatprep.subr.bf16.mxu0 %v2415_v3  ;;  %v26_v15 = vld [vmem:[%s4647_s1 + $0x18] sm:$0xff] }
   0x5   :  { %v2449_v12 = vpack.c.bf16 %v56_v10, %v55_v9  ;;  %2418 = vmatpush3.bf16.msra.mxu0 %v2417_v7  ;;  %v2421_v17 = vpack.c.bf16 %v26_v15, %v25_v14  ;;  %v73_v18 = vld [vmem:[%s4647_s1 + $0x190] sm:$0xff]  ;;  %v74_v19 = vld [vmem:[%s4647_s1 + $0x198] sm:$0xff]  ;;  %v43_v23 = vld [vmem:[%s4647_s1 + $0xa0] sm:$0xff]  ;;  %v3133_v13 = vsub.s32 %v553_v63, %v555_v0 }
   0x6   :  { %2448 = vmatprep.subr.bf16.mxu1 %v2447_v8  ;;  %v57_v20 = vld [vmem:[%s4647_s1 + $0x110] sm:$0xff]  ;;  %v2451_v21 = vpack.c.bf16 %v74_v19, %v73_v18  ;;  %v58_v22 = vld [vmem:[%s4647_s1 + $0x118] sm:$0xff]  ;;  %v44_v24 = vld [vmem:[%s4647_s1 + $0xa8] sm:$0xff]  ;;  %2420 = vmatprep.subr.bf16.mxu0 %v2419_v16 }
   0x7   :  { %2450 = vmatpush3.bf16.msra.mxu1 %v2449_v12  ;;  %v2453_v25 = vpack.c.bf16 %v58_v22, %v57_v20  ;;  %v2423_v26 = vpack.c.bf16 %v44_v24, %v43_v23  ;;  %v27_v27 = vld [vmem:[%s4647_s1 + $0x20] sm:$0xff]  ;;  %v28_v28 = vld [vmem:[%s4647_s1 + $0x28] sm:$0xff]  ;;  %v45_v35 = vld [vmem:[%s4647_s1 + $0xb0] sm:$0xff] }
   0x8   :  { %v75_v29 = vld [vmem:[%s4647_s1 + $0x1a0] sm:$0xff]  ;;  %2452 = vmatprep.subr.bf16.mxu1 %v2451_v21  ;;  %v76_v30 = vld [vmem:[%s4647_s1 + $0x1a8] sm:$0xff]  ;;  %v2425_v33 = vpack.c.bf16 %v28_v28, %v27_v27  ;;  %v46_v36 = vld [vmem:[%s4647_s1 + $0xb8] sm:$0xff] }
   0x9   :  { %v59_v31 = vld [vmem:[%s4647_s1 + $0x120] sm:$0xff]  ;;  %v60_v32 = vld [vmem:[%s4647_s1 + $0x128] sm:$0xff]  ;;  %2422 = vmatpush3.bf16.msra.mxu0 %v2421_v17  ;;  %v2455_v34 = vpack.c.bf16 %v76_v30, %v75_v29  ;;  %v29_v37 = vld [vmem:[%s4647_s1 + $0x30] sm:$0xff]  ;;  %v2427_v39 = vpack.c.bf16 %v46_v36, %v45_v35 }
   0xa   :  { %2424 = vmatprep.subr.bf16.mxu0 %v2423_v26  ;;  %v2457_v38 = vpack.c.bf16 %v60_v32, %v59_v31  ;;  %v30_v40 = vld [vmem:[%s4647_s1 + $0x38] sm:$0xff]  ;;  %v77_v41 = vld [vmem:[%s4647_s1 + $0x1b0] sm:$0xff]  ;;  %v47_v46 = vld [vmem:[%s4647_s1 + $0xc0] sm:$0xff] }
   0xb   :  { %2454 = vmatpush3.bf16.msra.mxu1 %v2453_v25  ;;  %v78_v42 = vld [vmem:[%s4647_s1 + $0x1b8] sm:$0xff]  ;;  %v61_v44 = vld [vmem:[%s4647_s1 + $0x130] sm:$0xff]  ;;  %v48_v50 = vld [vmem:[%s4647_s1 + $0xc8] sm:$0xff]  ;;  %v2429_v51 = vpack.c.bf16 %v30_v40, %v29_v37 }
   0xc   :  { %2456 = vmatprep.subr.bf16.mxu1 %v2455_v34  ;;  %v2459_v43 = vpack.c.bf16 %v78_v42, %v77_v41  ;;  %v62_v45 = vld [vmem:[%s4647_s1 + $0x138] sm:$0xff]  ;;  %v79_v52 = vld [vmem:[%s4647_s1 + $0x1c0] sm:$0xff]  ;;  %v80_v53 = vld [vmem:[%s4647_s1 + $0x1c8] sm:$0xff]  ;;  %v2431_v55 = vpack.c.bf16 %v48_v50, %v47_v46 }
   0xd   :  { %2426 = vmatpush3.bf16.msra.mxu0 %v2425_v33  ;;  %v2461_v54 = vpack.c.bf16 %v62_v45, %v61_v44  ;;  %v31_v56 = vld [vmem:[%s4647_s1 + $0x40] sm:$0xff]  ;;  %v32_v57 = vld [vmem:[%s4647_s1 + $0x48] sm:$0xff]  ;;  %v2463_v59 = vpack.c.bf16 %v80_v53, %v79_v52  ;;  %v49_v61 = vld [vmem:[%s4647_s1 + $0xd0] sm:$0xff] }
   0xe   :  { %2428 = vmatprep.subr.bf16.mxu0 %v2427_v39  ;;  %v63_v58 = vld [vmem:[%s4647_s1 + $0x140] sm:$0xff]  ;;  %v64_v60 = vld [vmem:[%s4647_s1 + $0x148] sm:$0xff]  ;;  %v50_v62 = vld [vmem:[%s4647_s1 + $0xd8] sm:$0xff]  ;;  %v2433_v3 = vpack.c.bf16 %v32_v57, %v31_v56 }
   0xf   :  { %2458 = vmatpush3.bf16.msra.mxu1 %v2457_v38  ;;  %v81_v1 = vld [vmem:[%s4647_s1 + $0x1d0] sm:$0xff]  ;;  %v82_v2 = vld [vmem:[%s4647_s1 + $0x1d8] sm:$0xff]  ;;  %v2465_v4 = vpack.c.bf16 %v64_v60, %v63_v58  ;;  %v2435_v5 = vpack.c.bf16 %v50_v62, %v49_v61  ;;  %v51_v11 = vld [vmem:[%s4647_s1 + $0xe0] sm:$0xff] }
  0x10   :  { %2460 = vmatprep.subr.bf16.mxu1 %v2459_v43  ;;  %v33_v6 = vld [vmem:[%s4647_s1 + $0x50] sm:$0xff]  ;;  %v34_v7 = vld [vmem:[%s4647_s1 + $0x58] sm:$0xff]  ;;  %v2467_v9 = vpack.c.bf16 %v82_v2, %v81_v1  ;;  %v52_v12 = vld [vmem:[%s4647_s1 + $0xe8] sm:$0xff] }
  0x11   :  { %2430 = vmatpush3.bf16.msra.mxu0 %v2429_v51  ;;  %v65_v8 = vld [vmem:[%s4647_s1 + $0x150] sm:$0xff]  ;;  %v66_v10 = vld [vmem:[%s4647_s1 + $0x158] sm:$0xff]  ;;  %v83_v14 = vld [vmem:[%s4647_s1 + $0x1e0] sm:$0xff]  ;;  %v2437_v16 = vpack.c.bf16 %v34_v7, %v33_v6  ;;  %v2439_v19 = vpack.c.bf16 %v52_v12, %v51_v11 }
  0x12   :  { %2432 = vmatprep.subr.bf16.mxu0 %v2431_v55  ;;  %v84_v15 = vld [vmem:[%s4647_s1 + $0x1e8] sm:$0xff]  ;;  %v35_v17 = vld [vmem:[%s4647_s1 + $0x60] sm:$0xff]  ;;  %v2469_v18 = vpack.c.bf16 %v66_v10, %v65_v8  ;;  %v53_v25 = vld [vmem:[%s4647_s1 + $0xf0] sm:$0xff] }
  0x13   :  { %2462 = vmatpush3.bf16.msra.mxu1 %v2461_v54  ;;  %v36_v20 = vld [vmem:[%s4647_s1 + $0x68] sm:$0xff]  ;;  %v67_v21 = vld [vmem:[%s4647_s1 + $0x160] sm:$0xff]  ;;  %v2471_v23 = vpack.c.bf16 %v84_v15, %v83_v14  ;;  %v54_v26 = vld [vmem:[%s4647_s1 + $0xf8] sm:$0xff] }
  0x14   :  { %2464 = vmatprep.subr.bf16.mxu1 %v2463_v59  ;;  %v15_v22 = vld [vmem:[%s4646_s0] sm:$0xff]  ;;  %v68_v24 = vld [vmem:[%s4647_s1 + $0x168] sm:$0xff]  ;;  %v85_v29 = vld [vmem:[%s4647_s1 + $0x1f0] sm:$0xff]  ;;  %v2441_v31 = vpack.c.bf16 %v36_v20, %v35_v17  ;;  %v2443_v35 = vpack.c.bf16 %v54_v26, %v53_v25 }
  0x15   :  { %2434 = vmatpush3.bf16.msra.mxu0 %v2433_v3  ;;  %v557_v27 = vrot.slane %v15_v22, %v3133_v13  ;;  %v550_v28 = vcombine.high %v15_v22, %v15_v22  ;;  %v86_v30 = vld [vmem:[%s4647_s1 + $0x1f8] sm:$0xff]  ;;  %v2473_v34 = vpack.c.bf16 %v68_v24, %v67_v21  ;;  %v37_v36 = vld [vmem:[%s4647_s1 + $0x70] sm:$0xff]  ;;  %v103_v41 = vld [vmem:[%s4647_s1 + $0x280] sm:$0xff] }
  0x16   :  { %2436 = vmatprep.subr.bf16.mxu0 %v2435_v5  ;;  %v38_v37 = vld [vmem:[%s4647_s1 + $0x78] sm:$0xff]  ;;  %v69_v38 = vld [vmem:[%s4647_s1 + $0x170] sm:$0xff]  ;;  %v2475_v39 = vpack.c.bf16 %v86_v30, %v85_v29  ;;  %v104_v42 = vld [vmem:[%s4647_s1 + $0x288] sm:$0xff] }
  0x17   :  { %2466 = vmatpush3.bf16.msra.mxu1 %v2465_v4  ;;  %v565_v32 = vcombine.high %v557_v27, %v557_v27  ;;  %v564_v33 = vrot.slane %v550_v28, %v3133_v13  ;;  %v70_v40 = vld [vmem:[%s4647_s1 + $0x178] sm:$0xff]  ;;  %v135_v44 = vld [vmem:[%s4647_s1 + $0x380] sm:$0xff]  ;;  %v136_v45 = vld [vmem:[%s4647_s1 + $0x388] sm:$0xff]  ;;  %v2445_v46 = vpack.c.bf16 %v38_v37, %v37_v36  ;;  %v2479_v48 = vpack.c.bf16 %v104_v42, %v103_v41 }
  0x18   :  { %2468 = vmatprep.subr.bf16.mxu1 %v2467_v9  ;;  %v2477_v47 = vpack.c.bf16 %v70_v40, %v69_v38  ;;  %v87_v49 = vld [vmem:[%s4647_s1 + $0x200] sm:$0xff]  ;;  %v88_v50 = vld [vmem:[%s4647_s1 + $0x208] sm:$0xff]  ;;  %v2511_v52 = vpack.c.bf16 %v136_v45, %v135_v44  ;;  %v105_v54 = vld [vmem:[%s4647_s1 + $0x290] sm:$0xff] }
  0x19   :  { %2438 = vmatpush3.bf16.msra.mxu0 %v2437_v16  ;;  %782 = vmatprep.mubr.f32.mxu0 %v565_v32  ;;  %v566_v43 = vcombine.high %v564_v33, %v564_v33  ;;  %v119_v51 = vld [vmem:[%s4647_s1 + $0x300] sm:$0xff]  ;;  %v120_v53 = vld [vmem:[%s4647_s1 + $0x308] sm:$0xff]  ;;  %v106_v55 = vld [vmem:[%s4647_s1 + $0x298] sm:$0xff]  ;;  %v2481_v58 = vpack.c.bf16 %v88_v50, %v87_v49 }
  0x1a   :  { %2440 = vmatprep.subr.bf16.mxu0 %v2439_v19  ;;  %v137_v56 = vld [vmem:[%s4647_s1 + $0x390] sm:$0xff]  ;;  %v138_v57 = vld [vmem:[%s4647_s1 + $0x398] sm:$0xff]  ;;  %v2513_v59 = vpack.c.bf16 %v120_v53, %v119_v51  ;;  %v2483_v60 = vpack.c.bf16 %v106_v55, %v105_v54  ;;  %v107_v2 = vld [vmem:[%s4647_s1 + $0x2a0] sm:$0xff] }
  0x1b   :  { %2470 = vmatpush3.bf16.msra.mxu1 %v2469_v18  ;;  %852 = vmatprep.mubr.f32.mxu1 %v566_v43  ;;  %v89_v61 = vld [vmem:[%s4647_s1 + $0x210] sm:$0xff]  ;;  %v90_v62 = vld [vmem:[%s4647_s1 + $0x218] sm:$0xff]  ;;  %v2515_v0 = vpack.c.bf16 %v138_v57, %v137_v56  ;;  %v108_v3 = vld [vmem:[%s4647_s1 + $0x2a8] sm:$0xff] }
  0x1c   :  { %2472 = vmatprep.subr.bf16.mxu1 %v2471_v23  ;;  %v121_v63 = vld [vmem:[%s4647_s1 + $0x310] sm:$0xff]  ;;  %v122_v1 = vld [vmem:[%s4647_s1 + $0x318] sm:$0xff]  ;;  %v139_v4 = vld [vmem:[%s4647_s1 + $0x3a0] sm:$0xff]  ;;  %v2485_v6 = vpack.c.bf16 %v90_v62, %v89_v61  ;;  %v2487_v8 = vpack.c.bf16 %v108_v3, %v107_v2 }
  0x1d   :  { %2442 = vmatpush3.bf16.msra.mxu0 %v2441_v31  ;;  %v140_v5 = vld [vmem:[%s4647_s1 + $0x3a8] sm:$0xff]  ;;  %v2517_v7 = vpack.c.bf16 %v122_v1, %v121_v63  ;;  %v91_v9 = vld [vmem:[%s4647_s1 + $0x220] sm:$0xff]  ;;  %v109_v15 = vld [vmem:[%s4647_s1 + $0x2b0] sm:$0xff] }
  0x1e   :  { %2444 = vmatprep.subr.bf16.mxu0 %v2443_v35  ;;  %v92_v10 = vld [vmem:[%s4647_s1 + $0x228] sm:$0xff]  ;;  %v123_v11 = vld [vmem:[%s4647_s1 + $0x320] sm:$0xff]  ;;  %v2519_v12 = vpack.c.bf16 %v140_v5, %v139_v4  ;;  %v110_v16 = vld [vmem:[%s4647_s1 + $0x2b8] sm:$0xff] }
  0x1f   :  { %2474 = vmatpush3.bf16.msra.mxu1 %v2473_v34  ;;  %v124_v14 = vld [vmem:[%s4647_s1 + $0x328] sm:$0xff]  ;;  %v141_v17 = vld [vmem:[%s4647_s1 + $0x3b0] sm:$0xff]  ;;  %v142_v18 = vld [vmem:[%s4647_s1 + $0x3b8] sm:$0xff]  ;;  %v2489_v19 = vpack.c.bf16 %v92_v10, %v91_v9  ;;  %v2491_v21 = vpack.c.bf16 %v110_v16, %v109_v15 }
  0x20   :  { %2476 = vmatprep.subr.bf16.mxu1 %v2475_v39  ;;  %v2521_v20 = vpack.c.bf16 %v124_v14, %v123_v11  ;;  %v93_v22 = vld [vmem:[%s4647_s1 + $0x230] sm:$0xff]  ;;  %v94_v23 = vld [vmem:[%s4647_s1 + $0x238] sm:$0xff]  ;;  %v2523_v25 = vpack.c.bf16 %v142_v18, %v141_v17  ;;  %v112_v28 = vld [vmem:[%s4647_s1 + $0x2c8] sm:$0xff] }
  0x21   :  { %2446 = vmatpush3.bf16.msra.mxu0 %v2445_v46  ;;  %v125_v24 = vld [vmem:[%s4647_s1 + $0x330] sm:$0xff]  ;;  %v126_v26 = vld [vmem:[%s4647_s1 + $0x338] sm:$0xff]  ;;  %v143_v29 = vld [vmem:[%s4647_s1 + $0x3c0] sm:$0xff]  ;;  %v2493_v32 = vpack.c.bf16 %v94_v23, %v93_v22 }
  0x22   :  { %2480 = vmatprep.subr.bf16.mxu0 %v2479_v48  ;;  %v144_v30 = vld [vmem:[%s4647_s1 + $0x3c8] sm:$0xff]  ;;  %v2525_v35 = vpack.c.bf16 %v126_v26, %v125_v24  ;;  %v95_v37 = vld [vmem:[%s4647_s1 + $0x240] sm:$0xff]  ;;  %v113_v42 = vld [vmem:[%s4647_s1 + $0x2d0] sm:$0xff] }
  0x23   :  { %2478 = vmatpush3.bf16.msra.mxu1 %v2477_v47  ;;  %v16_v31 = vld [vmem:[%s4646_s0 + $0x8] sm:$0xff]  ;;  %v127_v39 = vld [vmem:[%s4647_s1 + $0x340] sm:$0xff]  ;;  %v2527_v40 = vpack.c.bf16 %v144_v30, %v143_v29  ;;  %v114_v43 = vld [vmem:[%s4647_s1 + $0x2d8] sm:$0xff] }
  0x24   :  { %2512 = vmatprep.subr.bf16.mxu1 %v2511_v52  ;;  %783 = vmatmul.mubr.f32.vlgmr.msra.gmra.mrb[0].mxu0 %v557_v27  ;;  %v111_v27 = vld [vmem:[%s4647_s1 + $0x2c0] sm:$0xff]  ;;  %v567_v34 = vcombine.high %v16_v31, %v16_v31  ;;  %v96_v38 = vld [vmem:[%s4647_s1 + $0x248] sm:$0xff]  ;;  %v145_v46 = vld [vmem:[%s4647_s1 + $0x3d0] sm:$0xff]  ;;  %v2499_v51 = vpack.c.bf16 %v114_v43, %v113_v42 }
  0x25   :  { %2482 = vmatpush3.bf16.msra.mxu0 %v2481_v58  ;;  %v2495_v36 = vpack.c.bf16 %v112_v28, %v111_v27  ;;  %v128_v41 = vld [vmem:[%s4647_s1 + $0x348] sm:$0xff]  ;;  %v146_v47 = vld [vmem:[%s4647_s1 + $0x3d8] sm:$0xff]  ;;  %v2497_v48 = vpack.c.bf16 %v96_v38, %v95_v37  ;;  %v97_v52 = vld [vmem:[%s4647_s1 + $0x250] sm:$0xff] }
  0x26   :  { %853 = vmatmul.mubr.f32.vlgmr.msra.gmra.mrb[0].mxu1 %v564_v33  ;;  %2484 = vmatprep.subr.bf16.mxu0 %v2483_v60  ;;  %v3294_v33 = vrot.slane %v16_v31, %v3133_v13  ;;  %v3317_v45 = vrot.slane %v567_v34, %v3133_v13  ;;  %v2529_v50 = vpack.c.bf16 %v128_v41, %v127_v39  ;;  %v98_v53 = vld [vmem:[%s4647_s1 + $0x258] sm:$0xff]  ;;  %v129_v54 = vld [vmem:[%s4647_s1 + $0x350] sm:$0xff]  ;;  %v115_v57 = vld [vmem:[%s4647_s1 + $0x2e0] sm:$0xff] }
  0x27   :  { %2514 = vmatpush3.bf16.msra.mxu1 %v2513_v59  ;;  %v2531_v55 = vpack.c.bf16 %v146_v47, %v145_v46  ;;  %v130_v56 = vld [vmem:[%s4647_s1 + $0x358] sm:$0xff]  ;;  %v116_v58 = vld [vmem:[%s4647_s1 + $0x2e8] sm:$0xff]  ;;  %v147_v59 = vld [vmem:[%s4647_s1 + $0x3e0] sm:$0xff]  ;;  %v2501_v61 = vpack.c.bf16 %v98_v53, %v97_v52 }
  0x28   :  { %2516 = vmatprep.subr.bf16.mxu1 %v2515_v0  ;;  %v582_v44 = vcombine.high %v3294_v33, %v3294_v33  ;;  %v583_v49 = vcombine.high %v3317_v45, %v3317_v45  ;;  %v148_v60 = vld [vmem:[%s4647_s1 + $0x3e8] sm:$0xff]  ;;  %v2533_v62 = vpack.c.bf16 %v130_v56, %v129_v54  ;;  %v2503_v63 = vpack.c.bf16 %v116_v58, %v115_v57  ;;  %v99_v0 = vld [vmem:[%s4647_s1 + $0x260] sm:$0xff]  ;;  %v117_v5 = vld [vmem:[%s4647_s1 + $0x2f0] sm:$0xff] }
  0x29   :  { %2486 = vmatpush3.bf16.msra.mxu0 %v2485_v6  ;;  %v100_v1 = vld [vmem:[%s4647_s1 + $0x268] sm:$0xff]  ;;  %v131_v2 = vld [vmem:[%s4647_s1 + $0x360] sm:$0xff]  ;;  %v2535_v3 = vpack.c.bf16 %v148_v60, %v147_v59  ;;  %v118_v6 = vld [vmem:[%s4647_s1 + $0x2f8] sm:$0xff] }
  0x2a   :  { %2488 = vmatprep.subr.bf16.mxu0 %v2487_v8  ;;  %922 = vmatprep.mubr.f32.mxu0 %v582_v44  ;;  %v132_v4 = vld [vmem:[%s4647_s1 + $0x368] sm:$0xff]  ;;  %v150_v8 = vld [vmem:[%s4647_s1 + $0x3f8] sm:$0xff]  ;;  %v2505_v9 = vpack.c.bf16 %v100_v1, %v99_v0  ;;  %v2507_v11 = vpack.c.bf16 %v118_v6, %v117_v5  ;;  %v133_v15 = vld [vmem:[%s4647_s1 + $0x370] sm:$0xff] }
  0x2b   :  { %2518 = vmatpush3.bf16.msra.mxu1 %v2517_v7  ;;  %992 = vmatprep.mubr.f32.mxu1 %v583_v49  ;;  %v149_v7 = vld [vmem:[%s4647_s1 + $0x3f0] sm:$0xff]  ;;  %v2537_v10 = vpack.c.bf16 %v132_v4, %v131_v2  ;;  %v102_v14 = vld [vmem:[%s4647_s1 + $0x278] sm:$0xff]  ;;  %v167_v18 = vld [vmem:[%s4647_s1 + $0x480] sm:$0xff] }
  0x2c   :  { %2520 = vmatprep.subr.bf16.mxu1 %v2519_v12  ;;  %v101_v12 = vld [vmem:[%s4647_s1 + $0x270] sm:$0xff]  ;;  %v2539_v16 = vpack.c.bf16 %v150_v8, %v149_v7  ;;  %v134_v17 = vld [vmem:[%s4647_s1 + $0x378] sm:$0xff]  ;;  %v151_v23 = vld [vmem:[%s4647_s1 + $0x400] sm:$0xff] }
  0x2d   :  { %2490 = vmatpush3.bf16.msra.mxu0 %v2489_v19  ;;  %v168_v19 = vld [vmem:[%s4647_s1 + $0x488] sm:$0xff]  ;;  %v2509_v22 = vpack.c.bf16 %v102_v14, %v101_v12  ;;  %v2541_v24 = vpack.c.bf16 %v134_v17, %v133_v15  ;;  %v183_v27 = vld [vmem:[%s4647_s1 + $0x500] sm:$0xff]  ;;  %v169_v30 = vld [vmem:[%s4647_s1 + $0x490] sm:$0xff] }
  0x2e   :  { %2492 = vmatprep.subr.bf16.mxu0 %v2491_v21  ;;  %v200_v21 = vld [vmem:[%s4647_s1 + $0x588] sm:$0xff]  ;;  %v170_v31 = vld [vmem:[%s4647_s1 + $0x498] sm:$0xff]  ;;  %v17_v37 = vld [vmem:[%s4646_s0 + $0x10] sm:$0xff] }
  0x2f   :  { %2522 = vmatpush3.bf16.msra.mxu1 %v2521_v20  ;;  %v199_v20 = vld [vmem:[%s4647_s1 + $0x580] sm:$0xff]  ;;  %v152_v26 = vld [vmem:[%s4647_s1 + $0x408] sm:$0xff]  ;;  %v202_v34 = vld [vmem:[%s4647_s1 + $0x598] sm:$0xff]  ;;  %v2547_v38 = vpack.c.bf16 %v170_v31, %v169_v30  ;;  %v3436_v42 = vrot.slane %v17_v37, %v3133_v13  ;;  %v584_v43 = vcombine.high %v17_v37, %v17_v37 }
  0x30   :  { %2524 = vmatprep.subr.bf16.mxu1 %v2523_v25  ;;  %v2543_v25 = vpack.c.bf16 %v168_v19, %v167_v18  ;;  %v184_v28 = vld [vmem:[%s4647_s1 + $0x508] sm:$0xff]  ;;  %v2575_v29 = vpack.c.bf16 %v200_v21, %v199_v20  ;;  %v153_v39 = vld [vmem:[%s4647_s1 + $0x410] sm:$0xff]  ;;  %v186_v46 = vld [vmem:[%s4647_s1 + $0x518] sm:$0xff] }
  0x31   :  { %2494 = vmatpush3.bf16.msra.mxu0 %v2493_v32  ;;  %v201_v32 = vld [vmem:[%s4647_s1 + $0x590] sm:$0xff]  ;;  %v171_v47 = vld [vmem:[%s4647_s1 + $0x4a0] sm:$0xff]  ;;  %v3457_v52 = vrot.slane %v584_v43, %v3133_v13  ;;  %v156_v56 = vld [vmem:[%s4647_s1 + $0x428] sm:$0xff] }
  0x32   :  { %2496 = vmatprep.subr.bf16.mxu0 %v2495_v36  ;;  %v2577_v36 = vpack.c.bf16 %v184_v28, %v183_v27  ;;  %v185_v41 = vld [vmem:[%s4647_s1 + $0x510] sm:$0xff]  ;;  %v2579_v44 = vpack.c.bf16 %v202_v34, %v201_v32  ;;  %v203_v49 = vld [vmem:[%s4647_s1 + $0x5a0] sm:$0xff]  ;;  %v188_v59 = vld [vmem:[%s4647_s1 + $0x528] sm:$0xff] }
  0x33   :  { %2526 = vmatpush3.bf16.msra.mxu1 %v2525_v35  ;;  %v2545_v35 = vpack.c.bf16 %v152_v26, %v151_v23  ;;  %v187_v57 = vld [vmem:[%s4647_s1 + $0x520] sm:$0xff]  ;;  %v173_v60 = vld [vmem:[%s4647_s1 + $0x4b0] sm:$0xff]  ;;  %v158_v4 = vld [vmem:[%s4647_s1 + $0x438] sm:$0xff] }
  0x34   :  { %2528 = vmatprep.subr.bf16.mxu1 %v2527_v40  ;;  %v154_v40 = vld [vmem:[%s4647_s1 + $0x418] sm:$0xff]  ;;  %v2585_v1 = vpack.c.bf16 %v188_v59, %v187_v57  ;;  %v189_v5 = vld [vmem:[%s4647_s1 + $0x530] sm:$0xff]  ;;  %v175_v8 = vld [vmem:[%s4647_s1 + $0x4c0] sm:$0xff] }
  0x35   :  { %2498 = vmatpush3.bf16.msra.mxu0 %v2497_v48  ;;  %v172_v48 = vld [vmem:[%s4647_s1 + $0x4a8] sm:$0xff]  ;;  %v2549_v53 = vpack.c.bf16 %v154_v40, %v153_v39  ;;  %v190_v7 = vld [vmem:[%s4647_s1 + $0x538] sm:$0xff]  ;;  %v191_v18 = vld [vmem:[%s4647_s1 + $0x540] sm:$0xff] }
  0x36   :  { %2500 = vmatprep.subr.bf16.mxu0 %v2499_v51  ;;  %v599_v51 = vcombine.high %v3436_v42, %v3436_v42  ;;  %v2551_v54 = vpack.c.bf16 %v172_v48, %v171_v47  ;;  %v2589_v14 = vpack.c.bf16 %v190_v7, %v189_v5  ;;  %v160_v17 = vld [vmem:[%s4647_s1 + $0x448] sm:$0xff]  ;;  %v177_v21 = vld [vmem:[%s4647_s1 + $0x4d0] sm:$0xff]  ;;  %v194_v32 = vld [vmem:[%s4647_s1 + $0x558] sm:$0xff] }
  0x37   :  { %2530 = vmatpush3.bf16.msra.mxu1 %v2529_v50  ;;  %v204_v50 = vld [vmem:[%s4647_s1 + $0x5a8] sm:$0xff]  ;;  %v209_v23 = vld [vmem:[%s4647_s1 + $0x5d0] sm:$0xff]  ;;  %v179_v34 = vld [vmem:[%s4647_s1 + $0x4e0] sm:$0xff] }
  0x38   :  { %2532 = vmatprep.subr.bf16.mxu1 %v2531_v55  ;;  %v155_v55 = vld [vmem:[%s4647_s1 + $0x420] sm:$0xff]  ;;  %v2583_v58 = vpack.c.bf16 %v204_v50, %v203_v49  ;;  %v192_v20 = vld [vmem:[%s4647_s1 + $0x548] sm:$0xff]  ;;  %v161_v28 = vld [vmem:[%s4647_s1 + $0x450] sm:$0xff] }
  0x39   :  { %2502 = vmatpush3.bf16.msra.mxu0 %v2501_v61  ;;  %v174_v61 = vld [vmem:[%s4647_s1 + $0x4b8] sm:$0xff]  ;;  %v2553_v0 = vpack.c.bf16 %v156_v56, %v155_v55  ;;  %v2593_v26 = vpack.c.bf16 %v192_v20, %v191_v18  ;;  %v193_v30 = vld [vmem:[%s4647_s1 + $0x550] sm:$0xff]  ;;  %v212_v37 = vld [vmem:[%s4647_s1 + $0x5e8] sm:$0xff] }
  0x3a   :  { %2504 = vmatprep.subr.bf16.mxu0 %v2503_v63  ;;  %v206_v63 = vld [vmem:[%s4647_s1 + $0x5b8] sm:$0xff]  ;;  %v2555_v2 = vpack.c.bf16 %v174_v61, %v173_v60  ;;  %v2597_v39 = vpack.c.bf16 %v194_v32, %v193_v30  ;;  %v164_v43 = vld [vmem:[%s4647_s1 + $0x468] sm:$0xff]  ;;  %v181_v48 = vld [vmem:[%s4647_s1 + $0x4f0] sm:$0xff] }
  0x3b   :  { %2534 = vmatpush3.bf16.msra.mxu1 %v2533_v62  ;;  %v205_v62 = vld [vmem:[%s4647_s1 + $0x5b0] sm:$0xff]  ;;  %v196_v47 = vld [vmem:[%s4647_s1 + $0x568] sm:$0xff]  ;;  %v182_v49 = vld [vmem:[%s4647_s1 + $0x4f8] sm:$0xff] }
  0x3c   :  { %2536 = vmatprep.subr.bf16.mxu1 %v2535_v3  ;;  %v157_v3 = vld [vmem:[%s4647_s1 + $0x430] sm:$0xff]  ;;  %v2587_v6 = vpack.c.bf16 %v206_v63, %v205_v62  ;;  %v2571_v55 = vpack.c.bf16 %v182_v49, %v181_v48  ;;  %v166_v57 = vld [vmem:[%s4647_s1 + $0x478] sm:$0xff]  ;;  %v231_v60 = vld [vmem:[%s4647_s1 + $0x680] sm:$0xff] }
  0x3d   :  { %2506 = vmatpush3.bf16.msra.mxu0 %v2505_v9  ;;  %v176_v9 = vld [vmem:[%s4647_s1 + $0x4c8] sm:$0xff]  ;;  %v2557_v12 = vpack.c.bf16 %v158_v4, %v157_v3  ;;  %v213_v50 = vld [vmem:[%s4647_s1 + $0x5f0] sm:$0xff]  ;;  %v198_v59 = vld [vmem:[%s4647_s1 + $0x578] sm:$0xff] }
  0x3e   :  { %2508 = vmatprep.subr.bf16.mxu0 %v2507_v11  ;;  %v208_v11 = vld [vmem:[%s4647_s1 + $0x5c8] sm:$0xff]  ;;  %v2559_v15 = vpack.c.bf16 %v176_v9, %v175_v8  ;;  %v165_v56 = vld [vmem:[%s4647_s1 + $0x470] sm:$0xff]  ;;  %v263_v62 = vld [vmem:[%s4647_s1 + $0x780] sm:$0xff] }
  0x3f   :  { %2538 = vmatpush3.bf16.msra.mxu1 %v2537_v10  ;;  %v207_v10 = vld [vmem:[%s4647_s1 + $0x5c0] sm:$0xff]  ;;  %v232_v61 = vld [vmem:[%s4647_s1 + $0x688] sm:$0xff]  ;;  %v233_v9 = vld [vmem:[%s4647_s1 + $0x690] sm:$0xff] }
  0x40   :  { %2540 = vmatprep.subr.bf16.mxu1 %v2539_v16  ;;  %v159_v16 = vld [vmem:[%s4647_s1 + $0x440] sm:$0xff]  ;;  %v2591_v19 = vpack.c.bf16 %v208_v11, %v207_v10  ;;  %v264_v63 = vld [vmem:[%s4647_s1 + $0x788] sm:$0xff]  ;;  %v2607_v3 = vpack.c.bf16 %v232_v61, %v231_v60  ;;  %v234_v10 = vld [vmem:[%s4647_s1 + $0x698] sm:$0xff] }
  0x41   :  { %2510 = vmatpush3.bf16.msra.mxu0 %v2509_v22  ;;  %v178_v22 = vld [vmem:[%s4647_s1 + $0x4d8] sm:$0xff]  ;;  %v215_v4 = vld [vmem:[%s4647_s1 + $0x600] sm:$0xff]  ;;  %v216_v5 = vld [vmem:[%s4647_s1 + $0x608] sm:$0xff]  ;;  %v2639_v7 = vpack.c.bf16 %v264_v63, %v263_v62  ;;  %v2611_v18 = vpack.c.bf16 %v234_v10, %v233_v9 }
  0x42   :  { %2544 = vmatprep.subr.bf16.mxu0 %v2543_v25  ;;  %v2561_v25 = vpack.c.bf16 %v160_v17, %v159_v16  ;;  %v2563_v27 = vpack.c.bf16 %v178_v22, %v177_v21  ;;  %v248_v8 = vld [vmem:[%s4647_s1 + $0x708] sm:$0xff]  ;;  %v2609_v16 = vpack.c.bf16 %v216_v5, %v215_v4  ;;  %v218_v20 = vld [vmem:[%s4647_s1 + $0x618] sm:$0xff]  ;;  %v249_v21 = vld [vmem:[%s4647_s1 + $0x710] sm:$0xff] }
  0x43   :  { %2542 = vmatpush3.bf16.msra.mxu1 %v2541_v24  ;;  %v210_v24 = vld [vmem:[%s4647_s1 + $0x5d8] sm:$0xff]  ;;  %v253_v48 = vld [vmem:[%s4647_s1 + $0x730] sm:$0xff]  ;;  %v256_v61 = vld [vmem:[%s4647_s1 + $0x748] sm:$0xff] }
  0x44   :  { %2576 = vmatprep.subr.bf16.mxu1 %v2575_v29  ;;  %923 = vmatmul.mubr.f32.vlgmr.msra.gmra.mrb[2].mxu0 %v3294_v33  ;;  %v2581_v33 = vpack.c.bf16 %v186_v46, %v185_v41  ;;  %v162_v29 = vld [vmem:[%s4647_s1 + $0x458] sm:$0xff]  ;;  %v2595_v31 = vpack.c.bf16 %v210_v24, %v209_v23  ;;  %v163_v41 = vld [vmem:[%s4647_s1 + $0x460] sm:$0xff]  ;;  %v241_v62 = vld [vmem:[%s4647_s1 + $0x6d0] sm:$0xff] }
  0x45   :  { %2546 = vmatpush3.bf16.msra.mxu0 %v2545_v35  ;;  %1062 = vmatprep.mubr.f32.mxu0 %v599_v51  ;;  %v180_v35 = vld [vmem:[%s4647_s1 + $0x4e8] sm:$0xff]  ;;  %v214_v51 = vld [vmem:[%s4647_s1 + $0x5f8] sm:$0xff]  ;;  %v235_v24 = vld [vmem:[%s4647_s1 + $0x6a0] sm:$0xff] }
  0x46   :  { %993 = vmatmul.mubr.f32.vlgmr.msra.gmra.mrb[2].mxu1 %v3317_v45  ;;  %2548 = vmatprep.subr.bf16.mxu0 %v2547_v38  ;;  %v600_v45 = vcombine.high %v3457_v52, %v3457_v52  ;;  %v2565_v38 = vpack.c.bf16 %v162_v29, %v161_v28  ;;  %v2567_v40 = vpack.c.bf16 %v180_v35, %v179_v34  ;;  %v250_v23 = vld [vmem:[%s4647_s1 + $0x718] sm:$0xff]  ;;  %v268_v28 = vld [vmem:[%s4647_s1 + $0x7a8] sm:$0xff]  ;;  %v251_v35 = vld [vmem:[%s4647_s1 + $0x720] sm:$0xff] }
  0x47   :  { %2578 = vmatpush3.bf16.msra.mxu1 %v2577_v36  ;;  %v211_v36 = vld [vmem:[%s4647_s1 + $0x5e0] sm:$0xff]  ;;  %v220_v34 = vld [vmem:[%s4647_s1 + $0x628] sm:$0xff]  ;;  %v242_v63 = vld [vmem:[%s4647_s1 + $0x6d8] sm:$0xff] }
  0x48   :  { %2580 = vmatprep.subr.bf16.mxu1 %v2579_v44  ;;  %1132 = vmatprep.mubr.f32.mxu1 %v600_v45  ;;  %v195_v44 = vld [vmem:[%s4647_s1 + $0x560] sm:$0xff]  ;;  %v2599_v46 = vpack.c.bf16 %v212_v37, %v211_v36  ;;  %v197_v45 = vld [vmem:[%s4647_s1 + $0x570] sm:$0xff]  ;;  %v2627_v4 = vpack.c.bf16 %v242_v63, %v241_v62  ;;  %v258_v9 = vld [vmem:[%s4647_s1 + $0x758] sm:$0xff] }
  0x49   :  { %2550 = vmatpush3.bf16.msra.mxu0 %v2549_v53  ;;  %v2569_v53 = vpack.c.bf16 %v164_v43, %v163_v41  ;;  %v237_v37 = vld [vmem:[%s4647_s1 + $0x6b0] sm:$0xff]  ;;  %v243_v10 = vld [vmem:[%s4647_s1 + $0x6e0] sm:$0xff] }
  0x4a   :  { %2552 = vmatprep.subr.bf16.mxu0 %v2551_v54  ;;  %v2601_v54 = vpack.c.bf16 %v196_v47, %v195_v44  ;;  %v222_v47 = vld [vmem:[%s4647_s1 + $0x638] sm:$0xff]  ;;  %v225_v5 = vld [vmem:[%s4647_s1 + $0x650] sm:$0xff] }
  0x4b   :  { %2582 = vmatpush3.bf16.msra.mxu1 %v2581_v33  ;;  %v18_v33 = vld [vmem:[%s4646_s0 + $0x18] sm:$0xff]  ;;  %v313_v62 = vld [vmem:[%s4647_s1 + $0x910] sm:$0xff] }
  0x4c   :  { %2584 = vmatprep.subr.bf16.mxu1 %v2583_v58  ;;  %v2603_v58 = vpack.c.bf16 %v214_v51, %v213_v50  ;;  %v3628_v11 = vrot.slane %v18_v33, %v3133_v13  ;;  %v254_v50 = vld [vmem:[%s4647_s1 + $0x738] sm:$0xff]  ;;  %v239_v51 = vld [vmem:[%s4647_s1 + $0x6c0] sm:$0xff] }
  0x4d   :  { %2554 = vmatpush3.bf16.msra.mxu0 %v2553_v0  ;;  %v601_v0 = vcombine.high %v18_v33, %v18_v33  ;;  %v271_v33 = vld [vmem:[%s4647_s1 + $0x7c0] sm:$0xff] }
  0x4e   :  { %2556 = vmatprep.subr.bf16.mxu0 %v2555_v2  ;;  %v2605_v2 = vpack.c.bf16 %v198_v59, %v197_v45  ;;  %v223_v45 = vld [vmem:[%s4647_s1 + $0x640] sm:$0xff] }
  0x4f   :  { %2586 = vmatpush3.bf16.msra.mxu1 %v2585_v1  ;;  %v2573_v1 = vpack.c.bf16 %v166_v57, %v165_v56  ;;  %v2653_v56 = vpack.c.bf16 %v254_v50, %v253_v48  ;;  %v255_v59 = vld [vmem:[%s4647_s1 + $0x740] sm:$0xff]  ;;  %v280_v48 = vld [vmem:[%s4647_s1 + $0x808] sm:$0xff] }
  0x50   :  { %2588 = vmatprep.subr.bf16.mxu1 %v2587_v6  ;;  %v247_v6 = vld [vmem:[%s4647_s1 + $0x700] sm:$0xff] }
  0x51   :  { %2558 = vmatpush3.bf16.msra.mxu0 %v2557_v12  ;;  %v265_v12 = vld [vmem:[%s4647_s1 + $0x790] sm:$0xff]  ;;  %v2641_v17 = vpack.c.bf16 %v248_v8, %v247_v6  ;;  %v226_v6 = vld [vmem:[%s4647_s1 + $0x658] sm:$0xff] }
  0x52   :  { %2560 = vmatprep.subr.bf16.mxu0 %v2559_v15  ;;  %v3637_v15 = vrot.slane %v601_v0, %v3133_v13  ;;  %v273_v0 = vld [vmem:[%s4647_s1 + $0x7d0] sm:$0xff] }
  0x53   :  { %2590 = vmatpush3.bf16.msra.mxu1 %v2589_v14  ;;  %v266_v14 = vld [vmem:[%s4647_s1 + $0x798] sm:$0xff] }
  0x54   :  { %2592 = vmatprep.subr.bf16.mxu1 %v2591_v19  ;;  %v217_v19 = vld [vmem:[%s4647_s1 + $0x610] sm:$0xff]  ;;  %v2643_v22 = vpack.c.bf16 %v266_v14, %v265_v12  ;;  %v617_v29 = vcombine.high %v3637_v15, %v3637_v15  ;;  %v244_v12 = vld [vmem:[%s4647_s1 + $0x6e8] sm:$0xff]  ;;  %v275_v14 = vld [vmem:[%s4647_s1 + $0x7e0] sm:$0xff] }
  0x55   :  { %2562 = vmatpush3.bf16.msra.mxu0 %v2561_v25  ;;  %v236_v25 = vld [vmem:[%s4647_s1 + $0x6a8] sm:$0xff]  ;;  %v2613_v30 = vpack.c.bf16 %v218_v20, %v217_v19  ;;  %v2631_v19 = vpack.c.bf16 %v244_v12, %v243_v10  ;;  %v227_v20 = vld [vmem:[%s4647_s1 + $0x660] sm:$0xff] }
  0x56   :  { %2564 = vmatprep.subr.bf16.mxu0 %v2563_v27  ;;  %v267_v27 = vld [vmem:[%s4647_s1 + $0x7a0] sm:$0xff]  ;;  %v2615_v32 = vpack.c.bf16 %v236_v25, %v235_v24  ;;  %v260_v24 = vld [vmem:[%s4647_s1 + $0x768] sm:$0xff]  ;;  %v245_v25 = vld [vmem:[%s4647_s1 + $0x6f0] sm:$0xff] }
  0x57   :  { %2594 = vmatpush3.bf16.msra.mxu1 %v2593_v26  ;;  %v616_v26 = vcombine.high %v3628_v11, %v3628_v11  ;;  %v2647_v36 = vpack.c.bf16 %v268_v28, %v267_v27  ;;  %v277_v27 = vld [vmem:[%s4647_s1 + $0x7f0] sm:$0xff]  ;;  %v278_v28 = vld [vmem:[%s4647_s1 + $0x7f8] sm:$0xff]  ;;  %v284_v10 = vld [vmem:[%s4647_s1 + $0x828] sm:$0xff] }
  0x58   :  { %2596 = vmatprep.subr.bf16.mxu1 %v2595_v31  ;;  %v2645_v31 = vpack.c.bf16 %v250_v23, %v249_v21  ;;  %v228_v21 = vld [vmem:[%s4647_s1 + $0x668] sm:$0xff]  ;;  %v315_v12 = vld [vmem:[%s4647_s1 + $0x920] sm:$0xff] }
  0x59   :  { %2566 = vmatpush3.bf16.msra.mxu0 %v2565_v38  ;;  %v238_v38 = vld [vmem:[%s4647_s1 + $0x6b8] sm:$0xff] }
  0x5a   :  { %2568 = vmatprep.subr.bf16.mxu0 %v2567_v40  ;;  %v270_v40 = vld [vmem:[%s4647_s1 + $0x7b8] sm:$0xff]  ;;  %v2619_v44 = vpack.c.bf16 %v238_v38, %v237_v37  ;;  %v295_v37 = vld [vmem:[%s4647_s1 + $0x880] sm:$0xff]  ;;  %v296_v38 = vld [vmem:[%s4647_s1 + $0x888] sm:$0xff] }
  0x5b   :  { %2598 = vmatpush3.bf16.msra.mxu1 %v2597_v39  ;;  %v269_v39 = vld [vmem:[%s4647_s1 + $0x7b0] sm:$0xff] }
  0x5c   :  { %2600 = vmatprep.subr.bf16.mxu1 %v2599_v46  ;;  %v221_v46 = vld [vmem:[%s4647_s1 + $0x630] sm:$0xff]  ;;  %v2651_v49 = vpack.c.bf16 %v270_v40, %v269_v39  ;;  %v327_v39 = vld [vmem:[%s4647_s1 + $0x980] sm:$0xff]  ;;  %v328_v40 = vld [vmem:[%s4647_s1 + $0x988] sm:$0xff] }
  0x5d   :  { %2570 = vmatpush3.bf16.msra.mxu0 %v2569_v53  ;;  %v240_v53 = vld [vmem:[%s4647_s1 + $0x6c8] sm:$0xff]  ;;  %v2703_v50 = vpack.c.bf16 %v328_v40, %v327_v39  ;;  %v305_v39 = vld [vmem:[%s4647_s1 + $0x8d0] sm:$0xff]  ;;  %v306_v40 = vld [vmem:[%s4647_s1 + $0x8d8] sm:$0xff] }
  0x5e   :  { %2572 = vmatprep.subr.bf16.mxu0 %v2571_v55  ;;  %v2621_v55 = vpack.c.bf16 %v222_v47, %v221_v46  ;;  %v2623_v57 = vpack.c.bf16 %v240_v53, %v239_v51  ;;  %v2671_v46 = vpack.c.bf16 %v296_v38, %v295_v37  ;;  %v279_v47 = vld [vmem:[%s4647_s1 + $0x800] sm:$0xff]  ;;  %v312_v51 = vld [vmem:[%s4647_s1 + $0x908] sm:$0xff]  ;;  %v297_v53 = vld [vmem:[%s4647_s1 + $0x890] sm:$0xff] }
  0x5f   :  { %2602 = vmatpush3.bf16.msra.mxu1 %v2601_v54  ;;  %v272_v54 = vld [vmem:[%s4647_s1 + $0x7c8] sm:$0xff] }
  0x60   :  { %2604 = vmatprep.subr.bf16.mxu1 %v2603_v58  ;;  %v224_v58 = vld [vmem:[%s4647_s1 + $0x648] sm:$0xff]  ;;  %v2655_v60 = vpack.c.bf16 %v272_v54, %v271_v33  ;;  %v298_v33 = vld [vmem:[%s4647_s1 + $0x898] sm:$0xff] }
  0x61   :  { %2574 = vmatpush3.bf16.msra.mxu0 %v2573_v1  ;;  %v274_v1 = vld [vmem:[%s4647_s1 + $0x7d8] sm:$0xff]  ;;  %v320_v38 = vld [vmem:[%s4647_s1 + $0x948] sm:$0xff] }
  0x62   :  { %2608 = vmatprep.subr.bf16.mxu0 %v2607_v3  ;;  %v2657_v3 = vpack.c.bf16 %v256_v61, %v255_v59  ;;  %v2659_v8 = vpack.c.bf16 %v274_v1, %v273_v0  ;;  %v2675_v59 = vpack.c.bf16 %v298_v33, %v297_v53  ;;  %v282_v61 = vld [vmem:[%s4647_s1 + $0x818] sm:$0xff]  ;;  %v299_v1 = vld [vmem:[%s4647_s1 + $0x8a0] sm:$0xff] }
  0x63   :  { %2606 = vmatpush3.bf16.msra.mxu1 %v2605_v2  ;;  %v2625_v2 = vpack.c.bf16 %v224_v58, %v223_v45  ;;  %v2673_v45 = vpack.c.bf16 %v280_v48, %v279_v47  ;;  %v314_v0 = vld [vmem:[%s4647_s1 + $0x918] sm:$0xff]  ;;  %v2691_v47 = vpack.c.bf16 %v306_v40, %v305_v39  ;;  %v289_v48 = vld [vmem:[%s4647_s1 + $0x850] sm:$0xff]  ;;  %v307_v33 = vld [vmem:[%s4647_s1 + $0x8e0] sm:$0xff] }
  0x64   :  { %2640 = vmatprep.subr.bf16.mxu1 %v2639_v7  ;;  %1063 = vmatmul.mubr.f32.vlgmr.msra.gmra.mrb[4].mxu0 %v3436_v42  ;;  %v219_v42 = vld [vmem:[%s4647_s1 + $0x620] sm:$0xff]  ;;  %v257_v7 = vld [vmem:[%s4647_s1 + $0x750] sm:$0xff]  ;;  %v322_v53 = vld [vmem:[%s4647_s1 + $0x958] sm:$0xff] }
  0x65   :  { %2610 = vmatpush3.bf16.msra.mxu0 %v2609_v16  ;;  %1202 = vmatprep.mubr.f32.mxu0 %v616_v26  ;;  %v2617_v41 = vpack.c.bf16 %v220_v34, %v219_v42  ;;  %v276_v16 = vld [vmem:[%s4647_s1 + $0x7e8] sm:$0xff]  ;;  %v246_v26 = vld [vmem:[%s4647_s1 + $0x6f8] sm:$0xff]  ;;  %v229_v42 = vld [vmem:[%s4647_s1 + $0x670] sm:$0xff] }
  0x66   :  { %1133 = vmatmul.mubr.f32.vlgmr.msra.gmra.mrb[4].mxu1 %v3457_v52  ;;  %2612 = vmatprep.subr.bf16.mxu0 %v2611_v18  ;;  %v252_v52 = vld [vmem:[%s4647_s1 + $0x728] sm:$0xff]  ;;  %v2661_v18 = vpack.c.bf16 %v258_v9, %v257_v7  ;;  %v2663_v23 = vpack.c.bf16 %v276_v16, %v275_v14  ;;  %v230_v34 = vld [vmem:[%s4647_s1 + $0x678] sm:$0xff]  ;;  %v301_v16 = vld [vmem:[%s4647_s1 + $0x8b0] sm:$0xff] }
  0x67   :  { %2642 = vmatpush3.bf16.msra.mxu1 %v2641_v17  ;;  %1272 = vmatprep.mubr.f32.mxu1 %v617_v29  ;;  %v2649_v43 = vpack.c.bf16 %v252_v52, %v251_v35  ;;  %v2629_v17 = vpack.c.bf16 %v226_v6, %v225_v5  ;;  %v2633_v29 = vpack.c.bf16 %v228_v21, %v227_v20  ;;  %v261_v35 = vld [vmem:[%s4647_s1 + $0x770] sm:$0xff]  ;;  %v262_v52 = vld [vmem:[%s4647_s1 + $0x778] sm:$0xff]  ;;  %v332_v5 = vld [vmem:[%s4647_s1 + $0x9a8] sm:$0xff] }
  0x68   :  { %2644 = vmatprep.subr.bf16.mxu1 %v2643_v22  ;;  %v259_v22 = vld [vmem:[%s4647_s1 + $0x760] sm:$0xff]  ;;  %v377_v39 = vld [vmem:[%s4647_s1 + $0xb10] sm:$0xff] }
  0x69   :  { %2614 = vmatpush3.bf16.msra.mxu0 %v2613_v30  ;;  %v19_v30 = vld [vmem:[%s4646_s0 + $0x20] sm:$0xff] }
  0x6a   :  { %2616 = vmatprep.subr.bf16.mxu0 %v2615_v32  ;;  %v2635_v32 = vpack.c.bf16 %v246_v26, %v245_v25  ;;  %v3835_v54 = vrot.slane %v19_v30, %v3133_v13  ;;  %v317_v25 = vld [vmem:[%s4647_s1 + $0x930] sm:$0xff] }
  0x6b   :  { %2646 = vmatpush3.bf16.msra.mxu1 %v2645_v31  ;;  %v2665_v31 = vpack.c.bf16 %v260_v24, %v259_v22  ;;  %v286_v24 = vld [vmem:[%s4647_s1 + $0x838] sm:$0xff] }
  0x6c   :  { %2648 = vmatprep.subr.bf16.mxu1 %v2647_v36  ;;  %v2667_v36 = vpack.c.bf16 %v278_v28, %v277_v27  ;;  %v318_v27 = vld [vmem:[%s4647_s1 + $0x938] sm:$0xff]  ;;  %v303_v28 = vld [vmem:[%s4647_s1 + $0x8c0] sm:$0xff] }
  0x6d   :  { %2618 = vmatpush3.bf16.msra.mxu0 %v2617_v41  ;;  %v618_v41 = vcombine.high %v19_v30, %v19_v30  ;;  %v335_v30 = vld [vmem:[%s4647_s1 + $0x9c0] sm:$0xff] }
  0x6e   :  { %2620 = vmatprep.subr.bf16.mxu0 %v2619_v44  ;;  %v2669_v44 = vpack.c.bf16 %v262_v52, %v261_v35  ;;  %v287_v35 = vld [vmem:[%s4647_s1 + $0x840] sm:$0xff] }
  0x6f   :  { %2650 = vmatpush3.bf16.msra.mxu1 %v2649_v43  ;;  %v2637_v43 = vpack.c.bf16 %v230_v34, %v229_v42  ;;  %v2717_v42 = vpack.c.bf16 %v318_v27, %v317_v25  ;;  %v319_v52 = vld [vmem:[%s4647_s1 + $0x940] sm:$0xff]  ;;  %v344_v25 = vld [vmem:[%s4647_s1 + $0xa08] sm:$0xff] }
  0x70   :  { %2652 = vmatprep.subr.bf16.mxu1 %v2651_v49  ;;  %v311_v49 = vld [vmem:[%s4647_s1 + $0x900] sm:$0xff] }
  0x71   :  { %2622 = vmatpush3.bf16.msra.mxu0 %v2621_v55  ;;  %v329_v55 = vld [vmem:[%s4647_s1 + $0x990] sm:$0xff]  ;;  %v2705_v58 = vpack.c.bf16 %v312_v51, %v311_v49  ;;  %v290_v49 = vld [vmem:[%s4647_s1 + $0x858] sm:$0xff] }
  0x72   :  { %2624 = vmatprep.subr.bf16.mxu0 %v2623_v57  ;;  %v3844_v57 = vrot.slane %v618_v41, %v3133_v13  ;;  %v337_v41 = vld [vmem:[%s4647_s1 + $0x9d0] sm:$0xff] }
  0x73   :  { %2654 = vmatpush3.bf16.msra.mxu1 %v2653_v56  ;;  %v330_v56 = vld [vmem:[%s4647_s1 + $0x998] sm:$0xff] }
  0x74   :  { %2656 = vmatprep.subr.bf16.mxu1 %v2655_v60  ;;  %v281_v60 = vld [vmem:[%s4647_s1 + $0x810] sm:$0xff]  ;;  %v2707_v63 = vpack.c.bf16 %v330_v56, %v329_v55  ;;  %v634_v6 = vcombine.high %v3844_v57, %v3844_v57  ;;  %v308_v55 = vld [vmem:[%s4647_s1 + $0x8e8] sm:$0xff]  ;;  %v339_v56 = vld [vmem:[%s4647_s1 + $0x9e0] sm:$0xff] }
  0x75   :  { %2626 = vmatpush3.bf16.msra.mxu0 %v2625_v2  ;;  %v300_v2 = vld [vmem:[%s4647_s1 + $0x8a8] sm:$0xff]  ;;  %v2677_v7 = vpack.c.bf16 %v282_v61, %v281_v60  ;;  %v2695_v60 = vpack.c.bf16 %v308_v55, %v307_v33  ;;  %v291_v61 = vld [vmem:[%s4647_s1 + $0x860] sm:$0xff] }
  0x76   :  { %2628 = vmatprep.subr.bf16.mxu0 %v2627_v4  ;;  %v331_v4 = vld [vmem:[%s4647_s1 + $0x9a0] sm:$0xff]  ;;  %v2679_v9 = vpack.c.bf16 %v300_v2, %v299_v1  ;;  %v324_v1 = vld [vmem:[%s4647_s1 + $0x968] sm:$0xff]  ;;  %v309_v2 = vld [vmem:[%s4647_s1 + $0x8f0] sm:$0xff] }
  0x77   :  { %2658 = vmatpush3.bf16.msra.mxu1 %v2657_v3  ;;  %v633_v3 = vcombine.high %v3835_v54, %v3835_v54  ;;  %v2711_v14 = vpack.c.bf16 %v332_v5, %v331_v4  ;;  %v341_v4 = vld [vmem:[%s4647_s1 + $0x9f0] sm:$0xff]  ;;  %v342_v5 = vld [vmem:[%s4647_s1 + $0x9f8] sm:$0xff]  ;;  %v348_v33 = vld [vmem:[%s4647_s1 + $0xa28] sm:$0xff] }
  0x78   :  { %2660 = vmatprep.subr.bf16.mxu1 %v2659_v8  ;;  %v2709_v8 = vpack.c.bf16 %v314_v0, %v313_v62  ;;  %v292_v62 = vld [vmem:[%s4647_s1 + $0x868] sm:$0xff]  ;;  %v379_v55 = vld [vmem:[%s4647_s1 + $0xb20] sm:$0xff] }
  0x79   :  { %2630 = vmatpush3.bf16.msra.mxu0 %v2629_v17  ;;  %v302_v17 = vld [vmem:[%s4647_s1 + $0x8b8] sm:$0xff] }
  0x7a   :  { %2632 = vmatprep.subr.bf16.mxu0 %v2631_v19  ;;  %v334_v19 = vld [vmem:[%s4647_s1 + $0x9b8] sm:$0xff]  ;;  %v2683_v22 = vpack.c.bf16 %v302_v17, %v301_v16  ;;  %v359_v16 = vld [vmem:[%s4647_s1 + $0xa80] sm:$0xff]  ;;  %v360_v17 = vld [vmem:[%s4647_s1 + $0xa88] sm:$0xff] }
  0x7b   :  { %2662 = vmatpush3.bf16.msra.mxu1 %v2661_v18  ;;  %v333_v18 = vld [vmem:[%s4647_s1 + $0x9b0] sm:$0xff] }
  0x7c   :  { %2664 = vmatprep.subr.bf16.mxu1 %v2663_v23  ;;  %v285_v23 = vld [vmem:[%s4647_s1 + $0x830] sm:$0xff]  ;;  %v2715_v26 = vpack.c.bf16 %v334_v19, %v333_v18  ;;  %v391_v18 = vld [vmem:[%s4647_s1 + $0xb80] sm:$0xff]  ;;  %v392_v19 = vld [vmem:[%s4647_s1 + $0xb88] sm:$0xff] }
  0x7d   :  { %2634 = vmatpush3.bf16.msra.mxu0 %v2633_v29  ;;  %v304_v29 = vld [vmem:[%s4647_s1 + $0x8c8] sm:$0xff]  ;;  %v2767_v27 = vpack.c.bf16 %v392_v19, %v391_v18 }
  0x7e   :  { %2636 = vmatprep.subr.bf16.mxu0 %v2635_v32  ;;  %v2685_v32 = vpack.c.bf16 %v286_v24, %v285_v23  ;;  %v2687_v34 = vpack.c.bf16 %v304_v29, %v303_v28  ;;  %v2735_v23 = vpack.c.bf16 %v360_v17, %v359_v16  ;;  %v343_v24 = vld [vmem:[%s4647_s1 + $0xa00] sm:$0xff]  ;;  %v376_v28 = vld [vmem:[%s4647_s1 + $0xb08] sm:$0xff]  ;;  %v361_v29 = vld [vmem:[%s4647_s1 + $0xa90] sm:$0xff] }
  0x7f   :  { %2666 = vmatpush3.bf16.msra.mxu1 %v2665_v31  ;;  %v336_v31 = vld [vmem:[%s4647_s1 + $0x9c8] sm:$0xff] }
  0x80   :  { %2668 = vmatprep.subr.bf16.mxu1 %v2667_v36  ;;  %v288_v36 = vld [vmem:[%s4647_s1 + $0x848] sm:$0xff]  ;;  %v2719_v37 = vpack.c.bf16 %v336_v31, %v335_v30  ;;  %v362_v30 = vld [vmem:[%s4647_s1 + $0xa98] sm:$0xff] }
  0x81   :  { %2638 = vmatpush3.bf16.msra.mxu0 %v2637_v43  ;;  %v338_v43 = vld [vmem:[%s4647_s1 + $0x9d8] sm:$0xff] }
  0x82   :  { %2672 = vmatprep.subr.bf16.mxu0 %v2671_v46  ;;  %v2721_v46 = vpack.c.bf16 %v320_v38, %v319_v52  ;;  %v2723_v51 = vpack.c.bf16 %v338_v43, %v337_v41  ;;  %v2739_v52 = vpack.c.bf16 %v362_v30, %v361_v29  ;;  %v346_v38 = vld [vmem:[%s4647_s1 + $0xa18] sm:$0xff]  ;;  %v363_v43 = vld [vmem:[%s4647_s1 + $0xaa0] sm:$0xff] }
  0x83   :  { %2670 = vmatpush3.bf16.msra.mxu1 %v2669_v44  ;;  %v2689_v44 = vpack.c.bf16 %v288_v36, %v287_v35  ;;  %v2737_v35 = vpack.c.bf16 %v344_v25, %v343_v24  ;;  %v378_v41 = vld [vmem:[%s4647_s1 + $0xb18] sm:$0xff] }
  0x84   :  { %2704 = vmatprep.subr.bf16.mxu1 %v2703_v50  ;;  %1203 = vmatmul.mubr.f32.vlgmr.msra.gmra.mrb[6].mxu0 %v3628_v11  ;;  %v283_v11 = vld [vmem:[%s4647_s1 + $0x820] sm:$0xff]  ;;  %v321_v50 = vld [vmem:[%s4647_s1 + $0x950] sm:$0xff] }
  0x85   :  { %2674 = vmatpush3.bf16.msra.mxu0 %v2673_v45  ;;  %1342 = vmatprep.mubr.f32.mxu0 %v633_v3  ;;  %v2681_v20 = vpack.c.bf16 %v284_v10, %v283_v11  ;;  %v340_v45 = vld [vmem:[%s4647_s1 + $0x9e8] sm:$0xff]  ;;  %v310_v3 = vld [vmem:[%s4647_s1 + $0x8f8] sm:$0xff]  ;;  %v293_v11 = vld [vmem:[%s4647_s1 + $0x870] sm:$0xff] }
  0x86   :  { %1273 = vmatmul.mubr.f32.vlgmr.msra.gmra.mrb[6].mxu1 %v3637_v15  ;;  %2676 = vmatprep.subr.bf16.mxu0 %v2675_v59  ;;  %v316_v15 = vld [vmem:[%s4647_s1 + $0x928] sm:$0xff]  ;;  %v2725_v59 = vpack.c.bf16 %v322_v53, %v321_v50  ;;  %v2727_v0 = vpack.c.bf16 %v340_v45, %v339_v56  ;;  %v294_v10 = vld [vmem:[%s4647_s1 + $0x878] sm:$0xff]  ;;  %v365_v45 = vld [vmem:[%s4647_s1 + $0xab0] sm:$0xff] }
  0x87   :  { %2706 = vmatpush3.bf16.msra.mxu1 %v2705_v58  ;;  %1412 = vmatprep.mubr.f32.mxu1 %v634_v6  ;;  %v2713_v21 = vpack.c.bf16 %v316_v15, %v315_v12  ;;  %v2693_v58 = vpack.c.bf16 %v290_v49, %v289_v48  ;;  %v2697_v6 = vpack.c.bf16 %v292_v62, %v291_v61  ;;  %v325_v12 = vld [vmem:[%s4647_s1 + $0x970] sm:$0xff]  ;;  %v326_v15 = vld [vmem:[%s4647_s1 + $0x978] sm:$0xff]  ;;  %v396_v48 = vld [vmem:[%s4647_s1 + $0xba8] sm:$0xff] }
  0x88   :  { %2708 = vmatprep.subr.bf16.mxu1 %v2707_v63  ;;  %v323_v63 = vld [vmem:[%s4647_s1 + $0x960] sm:$0xff] }
  0x89   :  { %2678 = vmatpush3.bf16.msra.mxu0 %v2677_v7  ;;  %v20_v7 = vld [vmem:[%s4646_s0 + $0x28] sm:$0xff] }
  0x8a   :  { %2680 = vmatprep.subr.bf16.mxu0 %v2679_v9  ;;  %v2699_v9 = vpack.c.bf16 %v310_v3, %v309_v2  ;;  %v4042_v31 = vrot.slane %v20_v7, %v3133_v13  ;;  %v381_v2 = vld [vmem:[%s4647_s1 + $0xb30] sm:$0xff] }
  0x8b   :  { %2710 = vmatpush3.bf16.msra.mxu1 %v2709_v8  ;;  %v2729_v8 = vpack.c.bf16 %v324_v1, %v323_v63  ;;  %v350_v1 = vld [vmem:[%s4647_s1 + $0xa38] sm:$0xff] }
  0x8c   :  { %2712 = vmatprep.subr.bf16.mxu1 %v2711_v14  ;;  %v2731_v14 = vpack.c.bf16 %v342_v5, %v341_v4  ;;  %v382_v4 = vld [vmem:[%s4647_s1 + $0xb38] sm:$0xff]  ;;  %v367_v5 = vld [vmem:[%s4647_s1 + $0xac0] sm:$0xff] }
  0x8d   :  { %2682 = vmatpush3.bf16.msra.mxu0 %v2681_v20  ;;  %v635_v20 = vcombine.high %v20_v7, %v20_v7  ;;  %v399_v7 = vld [vmem:[%s4647_s1 + $0xbc0] sm:$0xff] }
  0x8e   :  { %2684 = vmatprep.subr.bf16.mxu0 %v2683_v22  ;;  %v2733_v22 = vpack.c.bf16 %v326_v15, %v325_v12  ;;  %v383_v15 = vld [vmem:[%s4647_s1 + $0xb40] sm:$0xff] }
  0x8f   :  { %2714 = vmatpush3.bf16.msra.mxu1 %v2713_v21  ;;  %v2701_v21 = vpack.c.bf16 %v294_v10, %v293_v11  ;;  %v351_v11 = vld [vmem:[%s4647_s1 + $0xa40] sm:$0xff]  ;;  %v2781_v10 = vpack.c.bf16 %v382_v4, %v381_v2 }
  0x90   :  { %2716 = vmatprep.subr.bf16.mxu1 %v2715_v26  ;;  %v375_v26 = vld [vmem:[%s4647_s1 + $0xb00] sm:$0xff] }
  0x91   :  { %2686 = vmatpush3.bf16.msra.mxu0 %v2685_v32  ;;  %v393_v32 = vld [vmem:[%s4647_s1 + $0xb90] sm:$0xff]  ;;  %v2769_v36 = vpack.c.bf16 %v376_v28, %v375_v26 }
  0x92   :  { %2688 = vmatprep.subr.bf16.mxu0 %v2687_v34  ;;  %v4051_v34 = vrot.slane %v635_v20, %v3133_v13 }
  0x93   :  { %2718 = vmatpush3.bf16.msra.mxu1 %v2717_v42  ;;  %v394_v42 = vld [vmem:[%s4647_s1 + $0xb98] sm:$0xff] }
  0x94   :  { %2720 = vmatprep.subr.bf16.mxu1 %v2719_v37  ;;  %v345_v37 = vld [vmem:[%s4647_s1 + $0xa10] sm:$0xff]  ;;  %v2771_v40 = vpack.c.bf16 %v394_v42, %v393_v32  ;;  %v651_v49 = vcombine.high %v4051_v34, %v4051_v34 }
  0x95   :  { %2690 = vmatpush3.bf16.msra.mxu0 %v2689_v44  ;;  %v364_v44 = vld [vmem:[%s4647_s1 + $0xaa8] sm:$0xff]  ;;  %v2741_v50 = vpack.c.bf16 %v346_v38, %v345_v37 }
  0x96   :  { %2692 = vmatprep.subr.bf16.mxu0 %v2691_v47  ;;  %v395_v47 = vld [vmem:[%s4647_s1 + $0xba0] sm:$0xff]  ;;  %v2743_v53 = vpack.c.bf16 %v364_v44, %v363_v43 }
  0x97   :  { %2722 = vmatpush3.bf16.msra.mxu1 %v2721_v46  ;;  %v650_v46 = vcombine.high %v4042_v31, %v4042_v31  ;;  %v2775_v56 = vpack.c.bf16 %v396_v48, %v395_v47 }
  0x98   :  { %2724 = vmatprep.subr.bf16.mxu1 %v2723_v51  ;;  %v2773_v51 = vpack.c.bf16 %v378_v41, %v377_v39 }
  0x99   :  { %2694 = vmatpush3.bf16.msra.mxu0 %v2693_v58  ;;  %v366_v58 = vld [vmem:[%s4647_s1 + $0xab8] sm:$0xff] }
  0x9a   :  { %2696 = vmatprep.subr.bf16.mxu0 %v2695_v60  ;;  %v398_v60 = vld [vmem:[%s4647_s1 + $0xbb8] sm:$0xff]  ;;  %v2747_v63 = vpack.c.bf16 %v366_v58, %v365_v45 }
  0x9b   :  { %2726 = vmatpush3.bf16.msra.mxu1 %v2725_v59  ;;  %v397_v59 = vld [vmem:[%s4647_s1 + $0xbb0] sm:$0xff] }
  0x9c   :  { %2728 = vmatprep.subr.bf16.mxu1 %v2727_v0  ;;  %v349_v0 = vld [vmem:[%s4647_s1 + $0xa30] sm:$0xff]  ;;  %v2779_v3 = vpack.c.bf16 %v398_v60, %v397_v59 }
  0x9d   :  { %2698 = vmatpush3.bf16.msra.mxu0 %v2697_v6  ;;  %v368_v6 = vld [vmem:[%s4647_s1 + $0xac8] sm:$0xff] }
  0x9e   :  { %2700 = vmatprep.subr.bf16.mxu0 %v2699_v9  ;;  %v2749_v9 = vpack.c.bf16 %v350_v1, %v349_v0  ;;  %v2751_v12 = vpack.c.bf16 %v368_v6, %v367_v5 }
  0x9f   :  { %2730 = vmatpush3.bf16.msra.mxu1 %v2729_v8  ;;  %v400_v8 = vld [vmem:[%s4647_s1 + $0xbc8] sm:$0xff] }
  0xa0   :  { %2732 = vmatprep.subr.bf16.mxu1 %v2731_v14  ;;  %v352_v14 = vld [vmem:[%s4647_s1 + $0xa48] sm:$0xff] }
  0xa1   :  { %2702 = vmatpush3.bf16.msra.mxu0 %v2701_v21 }
  0xa2   :  { %2736 = vmatprep.subr.bf16.mxu0 %v2735_v23 }
  0xa3   :  { %2734 = vmatpush3.bf16.msra.mxu1 %v2733_v22 }
  0xa4   :  { %2768 = vmatprep.subr.bf16.mxu1 %v2767_v27  ;;  %1343 = vmatmul.mubr.f32.vlgmr.msra.gmra.mrb[8].mxu0 %v3835_v54  ;;  %v347_v54 = vld [vmem:[%s4647_s1 + $0xa20] sm:$0xff] }
  0xa5   :  { %2738 = vmatpush3.bf16.msra.mxu0 %v2737_v35  ;;  %1482 = vmatprep.mubr.f32.mxu0 %v650_v46  ;;  %v2745_v61 = vpack.c.bf16 %v348_v33, %v347_v54 }
  0xa6   :  { %1413 = vmatmul.mubr.f32.vlgmr.msra.gmra.mrb[8].mxu1 %v3844_v57  ;;  %2740 = vmatprep.subr.bf16.mxu0 %v2739_v52  ;;  %v380_v57 = vld [vmem:[%s4647_s1 + $0xb28] sm:$0xff] }
  0xa7   :  { %2770 = vmatpush3.bf16.msra.mxu1 %v2769_v36  ;;  %1552 = vmatprep.mubr.f32.mxu1 %v651_v49  ;;  %v2777_v62 = vpack.c.bf16 %v380_v57, %v379_v55 }
  0xa8   :  { %2772 = vmatprep.subr.bf16.mxu1 %v2771_v40 }
  0xa9   :  { %2742 = vmatpush3.bf16.msra.mxu0 %v2741_v50 }
  0xaa   :  { %2744 = vmatprep.subr.bf16.mxu0 %v2743_v53 }
  0xab   :  { %2774 = vmatpush3.bf16.msra.mxu1 %v2773_v51 }
  0xac   :  { %2776 = vmatprep.subr.bf16.mxu1 %v2775_v56 }
  0xad   :  { %2746 = vmatpush3.bf16.msra.mxu0 %v2745_v61 }
  0xae   :  { %2748 = vmatprep.subr.bf16.mxu0 %v2747_v63 }
  0xaf   :  { %2778 = vmatpush3.bf16.msra.mxu1 %v2777_v62 }
  0xb0   :  { %8 = vsyncpa [#allocation3], 0  ;;  %2780 = vmatprep.subr.bf16.mxu1 %v2779_v3  ;;  %v2783_v16 = vpack.c.bf16 %v400_v8, %v399_v7  ;;  %v384_v17 = vld [vmem:[%s4647_s1 + $0xb48] sm:$0xff]  ;;  %v369_v18 = vld [vmem:[%s4647_s1 + $0xad0] sm:$0xff]  ;;  %v2753_v22 = vpack.c.bf16 %v352_v14, %v351_v11  ;;  %vm1838_vm0 = vcmask 9216  }
  0xb1   :  { %v370_v19 = vld [vmem:[%s4647_s1 + $0xad8] sm:$0xff]  ;;  %v401_v20 = vld [vmem:[%s4647_s1 + $0xbd0] sm:$0xff]  ;;  %2750 = vmatpush3.bf16.msra.mxu0 %v2749_v9  ;;  %v2785_v23 = vpack.c.bf16 %v384_v17, %v383_v15  ;;  %v371_v30 = vld [vmem:[%s4647_s1 + $0xae0] sm:$0xff] }
  0xb2   :  { %v402_v21 = vld [vmem:[%s4647_s1 + $0xbd8] sm:$0xff]  ;;  %2752 = vmatprep.subr.bf16.mxu0 %v2751_v12  ;;  %v2755_v24 = vpack.c.bf16 %v370_v19, %v369_v18  ;;  %v353_v25 = vld [vmem:[%s4647_s1 + $0xa50] sm:$0xff]  ;;  %v372_v32 = vld [vmem:[%s4647_s1 + $0xae8] sm:$0xff] }
  0xb3   :  { %2782 = vmatpush3.bf16.msra.mxu1 %v2781_v10  ;;  %v354_v26 = vld [vmem:[%s4647_s1 + $0xa58] sm:$0xff]  ;;  %v385_v27 = vld [vmem:[%s4647_s1 + $0xb50] sm:$0xff]  ;;  %v2787_v28 = vpack.c.bf16 %v402_v21, %v401_v20  ;;  %v403_v42 = vld [vmem:[%s4647_s1 + $0xbe0] sm:$0xff]  ;;  %v2759_v37 = vpack.c.bf16 %v372_v32, %v371_v30 }
  0xb4   :  { %2784 = vmatprep.subr.bf16.mxu1 %v2783_v16  ;;  %v386_v29 = vld [vmem:[%s4647_s1 + $0xb58] sm:$0xff]  ;;  %v404_v35 = vld [vmem:[%s4647_s1 + $0xbe8] sm:$0xff]  ;;  %v2757_v36 = vpack.c.bf16 %v354_v26, %v353_v25  ;;  %v355_v38 = vld [vmem:[%s4647_s1 + $0xa60] sm:$0xff] }
  0xb5   :  { %2754 = vmatpush3.bf16.msra.mxu0 %v2753_v22  ;;  %v2789_v52 = vpack.c.bf16 %v386_v29, %v385_v27  ;;  %v356_v39 = vld [vmem:[%s4647_s1 + $0xa68] sm:$0xff]  ;;  %v387_v40 = vld [vmem:[%s4647_s1 + $0xb60] sm:$0xff]  ;;  %v2791_v41 = vpack.c.bf16 %v404_v35, %v403_v42  ;;  %v373_v44 = vld [vmem:[%s4647_s1 + $0xaf0] sm:$0xff] }
  0xb6   :  { %2756 = vmatprep.subr.bf16.mxu0 %v2755_v24  ;;  %v388_v43 = vld [vmem:[%s4647_s1 + $0xb68] sm:$0xff]  ;;  %v374_v46 = vld [vmem:[%s4647_s1 + $0xaf8] sm:$0xff]  ;;  %v405_v47 = vld [vmem:[%s4647_s1 + $0xbf0] sm:$0xff]  ;;  %v2761_v49 = vpack.c.bf16 %v356_v39, %v355_v38 }
  0xb7   :  { %2786 = vmatpush3.bf16.msra.mxu1 %v2785_v23  ;;  %v406_v48 = vld [vmem:[%s4647_s1 + $0xbf8] sm:$0xff]  ;;  %v21_v50 = vld [vmem:[%s4646_s0 + $0x30] sm:$0xff]  ;;  %v2793_v51 = vpack.c.bf16 %v388_v43, %v387_v40  ;;  %v2763_v53 = vpack.c.bf16 %v374_v46, %v373_v44  ;;  %v423_v45 = vld [vmem:[%s4647_s1 + $0xc80] sm:$0xff] }
  0xb8   :  { %2788 = vmatprep.subr.bf16.mxu1 %v2787_v28  ;;  %v357_v54 = vld [vmem:[%s4647_s1 + $0xa70] sm:$0xff]  ;;  %v358_v33 = vld [vmem:[%s4647_s1 + $0xa78] sm:$0xff]  ;;  %v2795_v56 = vpack.c.bf16 %v406_v48, %v405_v47  ;;  %v424_v58 = vld [vmem:[%s4647_s1 + $0xc88] sm:$0xff]  ;;  %v652_v61 = vcombine.high %v21_v50, %v21_v50  ;;  %v4249_v8 = vrot.slane %v21_v50, %v3133_v13 }
  0xb9   :  { %2758 = vmatpush3.bf16.msra.mxu0 %v2757_v36  ;;  %v389_v55 = vld [vmem:[%s4647_s1 + $0xb70] sm:$0xff]  ;;  %v390_v57 = vld [vmem:[%s4647_s1 + $0xb78] sm:$0xff]  ;;  %v455_v59 = vld [vmem:[%s4647_s1 + $0xd80] sm:$0xff]  ;;  %v2765_v62 = vpack.c.bf16 %v358_v33, %v357_v54  ;;  %v2799_v0 = vpack.c.bf16 %v424_v58, %v423_v45 }
  0xba   :  { %2760 = vmatprep.subr.bf16.mxu0 %v2759_v37  ;;  %v456_v60 = vld [vmem:[%s4647_s1 + $0xd88] sm:$0xff]  ;;  %v2797_v63 = vpack.c.bf16 %v390_v57, %v389_v55  ;;  %v407_v1 = vld [vmem:[%s4647_s1 + $0xc00] sm:$0xff]  ;;  %v425_v6 = vld [vmem:[%s4647_s1 + $0xc90] sm:$0xff]  ;;  %v4258_v10 = vrot.slane %v652_v61, %v3133_v13  ;;  %v667_v23 = vcombine.high %v4249_v8, %v4249_v8 }
  0xbb   :  { %2790 = vmatpush3.bf16.msra.mxu1 %v2789_v52  ;;  %v408_v2 = vld [vmem:[%s4647_s1 + $0xc08] sm:$0xff]  ;;  %v439_v3 = vld [vmem:[%s4647_s1 + $0xd00] sm:$0xff]  ;;  %v2831_v4 = vpack.c.bf16 %v456_v60, %v455_v59  ;;  %v426_v7 = vld [vmem:[%s4647_s1 + $0xc98] sm:$0xff] }
  0xbc   :  { %2792 = vmatprep.subr.bf16.mxu1 %v2791_v41  ;;  %v440_v5 = vld [vmem:[%s4647_s1 + $0xd08] sm:$0xff]  ;;  %v457_v9 = vld [vmem:[%s4647_s1 + $0xd90] sm:$0xff]  ;;  %v458_v11 = vld [vmem:[%s4647_s1 + $0xd98] sm:$0xff]  ;;  %v2801_v12 = vpack.c.bf16 %v408_v2, %v407_v1  ;;  %v2803_v15 = vpack.c.bf16 %v426_v7, %v425_v6  ;;  %v668_v26 = vcombine.high %v4258_v10, %v4258_v10 }
  0xbd   :  { %2762 = vmatpush3.bf16.msra.mxu0 %v2761_v49  ;;  %v2833_v14 = vpack.c.bf16 %v440_v5, %v439_v3  ;;  %v409_v16 = vld [vmem:[%s4647_s1 + $0xc10] sm:$0xff]  ;;  %v410_v17 = vld [vmem:[%s4647_s1 + $0xc18] sm:$0xff]  ;;  %v2835_v19 = vpack.c.bf16 %v458_v11, %v457_v9  ;;  %v427_v21 = vld [vmem:[%s4647_s1 + $0xca0] sm:$0xff] }
  0xbe   :  { %2764 = vmatprep.subr.bf16.mxu0 %v2763_v53  ;;  %v441_v18 = vld [vmem:[%s4647_s1 + $0xd10] sm:$0xff]  ;;  %v442_v20 = vld [vmem:[%s4647_s1 + $0xd18] sm:$0xff]  ;;  %v428_v22 = vld [vmem:[%s4647_s1 + $0xca8] sm:$0xff]  ;;  %v2805_v27 = vpack.c.bf16 %v410_v17, %v409_v16 }
  0xbf   :  { %2794 = vmatpush3.bf16.msra.mxu1 %v2793_v51  ;;  %v459_v24 = vld [vmem:[%s4647_s1 + $0xda0] sm:$0xff]  ;;  %v460_v25 = vld [vmem:[%s4647_s1 + $0xda8] sm:$0xff]  ;;  %v2837_v28 = vpack.c.bf16 %v442_v20, %v441_v18  ;;  %v2807_v29 = vpack.c.bf16 %v428_v22, %v427_v21  ;;  %v429_v35 = vld [vmem:[%s4647_s1 + $0xcb0] sm:$0xff] }
  0xc0   :  { %2796 = vmatprep.subr.bf16.mxu1 %v2795_v56  ;;  %v412_v30 = vld [vmem:[%s4647_s1 + $0xc28] sm:$0xff]  ;;  %v443_v32 = vld [vmem:[%s4647_s1 + $0xd20] sm:$0xff]  ;;  %v2839_v42 = vpack.c.bf16 %v460_v25, %v459_v24  ;;  %v430_v36 = vld [vmem:[%s4647_s1 + $0xcb8] sm:$0xff] }
  0xc1   :  { %2766 = vmatpush3.bf16.msra.mxu0 %v2765_v62  ;;  %v461_v52 = vld [vmem:[%s4647_s1 + $0xdb0] sm:$0xff]  ;;  %v462_v37 = vld [vmem:[%s4647_s1 + $0xdb8] sm:$0xff]  ;;  %v2811_v40 = vpack.c.bf16 %v430_v36, %v429_v35  ;;  %v431_v48 = vld [vmem:[%s4647_s1 + $0xcc0] sm:$0xff] }
  0xc2   :  { %2800 = vmatprep.subr.bf16.mxu0 %v2799_v0  ;;  %v413_v41 = vld [vmem:[%s4647_s1 + $0xc30] sm:$0xff]  ;;  %v414_v43 = vld [vmem:[%s4647_s1 + $0xc38] sm:$0xff]  ;;  %v2843_v46 = vpack.c.bf16 %v462_v37, %v461_v52  ;;  %v432_v49 = vld [vmem:[%s4647_s1 + $0xcc8] sm:$0xff] }
  0xc3   :  { %2798 = vmatpush3.bf16.msra.mxu1 %v2797_v63  ;;  %v445_v44 = vld [vmem:[%s4647_s1 + $0xd30] sm:$0xff]  ;;  %v446_v47 = vld [vmem:[%s4647_s1 + $0xd38] sm:$0xff]  ;;  %v463_v50 = vld [vmem:[%s4647_s1 + $0xdc0] sm:$0xff]  ;;  %v2813_v53 = vpack.c.bf16 %v414_v43, %v413_v41  ;;  %v2815_v33 = vpack.c.bf16 %v432_v49, %v431_v48 }
  0xc4   :  { %2832 = vmatprep.subr.bf16.mxu1 %v2831_v4  ;;  %1483 = vmatmul.mubr.f32.vlgmr.msra.gmra.mrb[10].mxu0 %v4042_v31  ;;  %v411_v31 = vld [vmem:[%s4647_s1 + $0xc20] sm:$0xff]  ;;  %v464_v51 = vld [vmem:[%s4647_s1 + $0xdc8] sm:$0xff]  ;;  %v2845_v54 = vpack.c.bf16 %v446_v47, %v445_v44  ;;  %v433_v59 = vld [vmem:[%s4647_s1 + $0xcd0] sm:$0xff] }
  0xc5   :  { %2802 = vmatpush3.bf16.msra.mxu0 %v2801_v12  ;;  %1622 = vmatprep.mubr.f32.mxu0 %v667_v23  ;;  %v2809_v38 = vpack.c.bf16 %v412_v30, %v411_v31  ;;  %v415_v55 = vld [vmem:[%s4647_s1 + $0xc40] sm:$0xff]  ;;  %v416_v56 = vld [vmem:[%s4647_s1 + $0xc48] sm:$0xff]  ;;  %v2847_v45 = vpack.c.bf16 %v464_v51, %v463_v50  ;;  %v434_v60 = vld [vmem:[%s4647_s1 + $0xcd8] sm:$0xff] }
  0xc6   :  { %1553 = vmatmul.mubr.f32.vlgmr.msra.gmra.mrb[10].mxu1 %v4051_v34  ;;  %2804 = vmatprep.subr.bf16.mxu0 %v2803_v15  ;;  %v444_v34 = vld [vmem:[%s4647_s1 + $0xd28] sm:$0xff]  ;;  %v447_v57 = vld [vmem:[%s4647_s1 + $0xd40] sm:$0xff]  ;;  %v465_v61 = vld [vmem:[%s4647_s1 + $0xdd0] sm:$0xff]  ;;  %v2817_v63 = vpack.c.bf16 %v416_v56, %v415_v55  ;;  %v2819_v1 = vpack.c.bf16 %v434_v60, %v433_v59 }
  0xc7   :  { %2834 = vmatpush3.bf16.msra.mxu1 %v2833_v14  ;;  %1692 = vmatprep.mubr.f32.mxu1 %v668_v26  ;;  %v2841_v39 = vpack.c.bf16 %v444_v34, %v443_v32  ;;  %v448_v58 = vld [vmem:[%s4647_s1 + $0xd48] sm:$0xff]  ;;  %v466_v62 = vld [vmem:[%s4647_s1 + $0xdd8] sm:$0xff]  ;;  %v417_v2 = vld [vmem:[%s4647_s1 + $0xc50] sm:$0xff] }
  0xc8   :  { %2836 = vmatprep.subr.bf16.mxu1 %v2835_v19  ;;  %v2849_v0 = vpack.c.bf16 %v448_v58, %v447_v57  ;;  %v418_v3 = vld [vmem:[%s4647_s1 + $0xc58] sm:$0xff]  ;;  %v449_v4 = vld [vmem:[%s4647_s1 + $0xd50] sm:$0xff]  ;;  %v2851_v5 = vpack.c.bf16 %v466_v62, %v465_v61  ;;  %v435_v7 = vld [vmem:[%s4647_s1 + $0xce0] sm:$0xff] }
  0xc9   :  { %2806 = vmatpush3.bf16.msra.mxu0 %v2805_v27  ;;  %v450_v6 = vld [vmem:[%s4647_s1 + $0xd58] sm:$0xff]  ;;  %v436_v9 = vld [vmem:[%s4647_s1 + $0xce8] sm:$0xff]  ;;  %v467_v11 = vld [vmem:[%s4647_s1 + $0xde0] sm:$0xff]  ;;  %v2821_v14 = vpack.c.bf16 %v418_v3, %v417_v2 }
  0xca   :  { %2808 = vmatprep.subr.bf16.mxu0 %v2807_v29  ;;  %v468_v12 = vld [vmem:[%s4647_s1 + $0xde8] sm:$0xff]  ;;  %v2853_v15 = vpack.c.bf16 %v450_v6, %v449_v4  ;;  %v2823_v16 = vpack.c.bf16 %v436_v9, %v435_v7  ;;  %v419_v17 = vld [vmem:[%s4647_s1 + $0xc60] sm:$0xff]  ;;  %v437_v22 = vld [vmem:[%s4647_s1 + $0xcf0] sm:$0xff] }
  0xcb   :  { %2838 = vmatpush3.bf16.msra.mxu1 %v2837_v28  ;;  %v420_v18 = vld [vmem:[%s4647_s1 + $0xc68] sm:$0xff]  ;;  %v451_v19 = vld [vmem:[%s4647_s1 + $0xd60] sm:$0xff]  ;;  %v2855_v20 = vpack.c.bf16 %v468_v12, %v467_v11  ;;  %v438_v23 = vld [vmem:[%s4647_s1 + $0xcf8] sm:$0xff] }
  0xcc   :  { %2840 = vmatprep.subr.bf16.mxu1 %v2839_v42  ;;  %v452_v21 = vld [vmem:[%s4647_s1 + $0xd68] sm:$0xff]  ;;  %v469_v24 = vld [vmem:[%s4647_s1 + $0xdf0] sm:$0xff]  ;;  %v470_v25 = vld [vmem:[%s4647_s1 + $0xdf8] sm:$0xff]  ;;  %v2825_v26 = vpack.c.bf16 %v420_v18, %v419_v17  ;;  %v2827_v29 = vpack.c.bf16 %v438_v23, %v437_v22 }
  0xcd   :  { %2810 = vmatpush3.bf16.msra.mxu0 %v2809_v38  ;;  %v22_v27 = vld [vmem:[%s4646_s0 + $0x38] sm:$0xff]  ;;  %v2857_v28 = vpack.c.bf16 %v452_v21, %v451_v19  ;;  %v421_v31 = vld [vmem:[%s4647_s1 + $0xc70] sm:$0xff]  ;;  %v2859_v42 = vpack.c.bf16 %v470_v25, %v469_v24  ;;  %v487_v35 = vld [vmem:[%s4647_s1 + $0xe80] sm:$0xff] }
  0xce   :  { %2812 = vmatprep.subr.bf16.mxu0 %v2811_v40  ;;  %v422_v30 = vld [vmem:[%s4647_s1 + $0xc78] sm:$0xff]  ;;  %v453_v32 = vld [vmem:[%s4647_s1 + $0xd70] sm:$0xff]  ;;  %v488_v36 = vld [vmem:[%s4647_s1 + $0xe88] sm:$0xff]  ;;  %v669_v38 = vcombine.high %v22_v27, %v22_v27  ;;  %v4456_v51 = vrot.slane %v22_v27, %v3133_v13 }
  0xcf   :  { %2842 = vmatpush3.bf16.msra.mxu1 %v2841_v39  ;;  %v454_v34 = vld [vmem:[%s4647_s1 + $0xd78] sm:$0xff]  ;;  %v519_v52 = vld [vmem:[%s4647_s1 + $0xf80] sm:$0xff]  ;;  %v520_v37 = vld [vmem:[%s4647_s1 + $0xf88] sm:$0xff]  ;;  %v2829_v39 = vpack.c.bf16 %v422_v30, %v421_v31  ;;  %v2863_v41 = vpack.c.bf16 %v488_v36, %v487_v35 }
  0xd0   :  { %2844 = vmatprep.subr.bf16.mxu1 %v2843_v46  ;;  %v2861_v40 = vpack.c.bf16 %v454_v34, %v453_v32  ;;  %v471_v43 = vld [vmem:[%s4647_s1 + $0xe00] sm:$0xff]  ;;  %v472_v44 = vld [vmem:[%s4647_s1 + $0xe08] sm:$0xff]  ;;  %v2895_v47 = vpack.c.bf16 %v520_v37, %v519_v52  ;;  %v489_v49 = vld [vmem:[%s4647_s1 + $0xe90] sm:$0xff] }
  0xd1   :  { %2814 = vmatpush3.bf16.msra.mxu0 %v2813_v53  ;;  %v503_v46 = vld [vmem:[%s4647_s1 + $0xf00] sm:$0xff]  ;;  %v504_v48 = vld [vmem:[%s4647_s1 + $0xf08] sm:$0xff]  ;;  %v490_v50 = vld [vmem:[%s4647_s1 + $0xe98] sm:$0xff]  ;;  %v2865_v55 = vpack.c.bf16 %v472_v44, %v471_v43 }
  0xd2   :  { %2816 = vmatprep.subr.bf16.mxu0 %v2815_v33  ;;  %v521_v53 = vld [vmem:[%s4647_s1 + $0xf90] sm:$0xff]  ;;  %v4465_v33 = vrot.slane %v669_v38, %v3133_v13  ;;  %v2897_v56 = vpack.c.bf16 %v504_v48, %v503_v46  ;;  %v2867_v57 = vpack.c.bf16 %v490_v50, %v489_v49  ;;  %v474_v58 = vld [vmem:[%s4647_s1 + $0xe18] sm:$0xff]  ;;  %v491_v61 = vld [vmem:[%s4647_s1 + $0xea0] sm:$0xff] }
  0xd3   :  { %2846 = vmatpush3.bf16.msra.mxu1 %v2845_v54  ;;  %v522_v54 = vld [vmem:[%s4647_s1 + $0xf98] sm:$0xff]  ;;  %v505_v59 = vld [vmem:[%s4647_s1 + $0xf10] sm:$0xff]  ;;  %v492_v62 = vld [vmem:[%s4647_s1 + $0xea8] sm:$0xff] }
  0xd4   :  { %2848 = vmatprep.subr.bf16.mxu1 %v2847_v45  ;;  %v473_v45 = vld [vmem:[%s4647_s1 + $0xe10] sm:$0xff]  ;;  %v2899_v13 = vpack.c.bf16 %v522_v54, %v521_v53  ;;  %v506_v60 = vld [vmem:[%s4647_s1 + $0xf18] sm:$0xff]  ;;  %v685_v2 = vcombine.high %v4465_v33, %v4465_v33  ;;  %v476_v6 = vld [vmem:[%s4647_s1 + $0xe28] sm:$0xff] }
  0xd5   :  { %2818 = vmatpush3.bf16.msra.mxu0 %v2817_v63  ;;  %v684_v63 = vcombine.high %v4456_v51, %v4456_v51  ;;  %v2869_v3 = vpack.c.bf16 %v474_v58, %v473_v45  ;;  %v2901_v4 = vpack.c.bf16 %v506_v60, %v505_v59  ;;  %v507_v7 = vld [vmem:[%s4647_s1 + $0xf20] sm:$0xff]  ;;  %v493_v11 = vld [vmem:[%s4647_s1 + $0xeb0] sm:$0xff]  ;;  %v494_v12 = vld [vmem:[%s4647_s1 + $0xeb8] sm:$0xff] }
  0xd6   :  { %2820 = vmatprep.subr.bf16.mxu0 %v2819_v1  ;;  %v524_v1 = vld [vmem:[%s4647_s1 + $0xfa8] sm:$0xff]  ;;  %v2875_v18 = vpack.c.bf16 %v494_v12, %v493_v11  ;;  %v477_v19 = vld [vmem:[%s4647_s1 + $0xe30] sm:$0xff]  ;;  %v510_v23 = vld [vmem:[%s4647_s1 + $0xf38] sm:$0xff] }
  0xd7   :  { %2850 = vmatpush3.bf16.msra.mxu1 %v2849_v0  ;;  %v523_v0 = vld [vmem:[%s4647_s1 + $0xfa0] sm:$0xff]  ;;  %v509_v21 = vld [vmem:[%s4647_s1 + $0xf30] sm:$0xff]  ;;  %v496_v25 = vld [vmem:[%s4647_s1 + $0xec8] sm:$0xff] }
  0xd8   :  { %2852 = vmatprep.subr.bf16.mxu1 %v2851_v5  ;;  %v2871_v5 = vpack.c.bf16 %v492_v62, %v491_v61  ;;  %v2903_v9 = vpack.c.bf16 %v524_v1, %v523_v0  ;;  %v495_v24 = vld [vmem:[%s4647_s1 + $0xec0] sm:$0xff]  ;;  %v528_v27 = vld [vmem:[%s4647_s1 + $0xfc8] sm:$0xff]  ;;  %v497_v36 = vld [vmem:[%s4647_s1 + $0xed0] sm:$0xff] }
  0xd9   :  { %2822 = vmatpush3.bf16.msra.mxu0 %v2821_v14  ;;  %v525_v14 = vld [vmem:[%s4647_s1 + $0xfb0] sm:$0xff]  ;;  %v2879_v31 = vpack.c.bf16 %v496_v25, %v495_v24  ;;  %v479_v30 = vld [vmem:[%s4647_s1 + $0xe40] sm:$0xff]  ;;  %v480_v32 = vld [vmem:[%s4647_s1 + $0xe48] sm:$0xff] }
  0xda   :  { %2824 = vmatprep.subr.bf16.mxu0 %v2823_v16  ;;  %v512_v35 = vld [vmem:[%s4647_s1 + $0xf48] sm:$0xff]  ;;  %v498_v52 = vld [vmem:[%s4647_s1 + $0xed8] sm:$0xff]  ;;  %v529_v37 = vld [vmem:[%s4647_s1 + $0xfd0] sm:$0xff] }
  0xdb   :  { %2854 = vmatpush3.bf16.msra.mxu1 %v2853_v15  ;;  %v526_v15 = vld [vmem:[%s4647_s1 + $0xfb8] sm:$0xff]  ;;  %v481_v43 = vld [vmem:[%s4647_s1 + $0xe50] sm:$0xff]  ;;  %v499_v49 = vld [vmem:[%s4647_s1 + $0xee0] sm:$0xff] }
  0xdc   :  { %2856 = vmatprep.subr.bf16.mxu1 %v2855_v20  ;;  %v478_v20 = vld [vmem:[%s4647_s1 + $0xe38] sm:$0xff]  ;;  %v2907_v22 = vpack.c.bf16 %v526_v15, %v525_v14  ;;  %v513_v46 = vld [vmem:[%s4647_s1 + $0xf50] sm:$0xff]  ;;  %v500_v50 = vld [vmem:[%s4647_s1 + $0xee8] sm:$0xff] }
  0xdd   :  { %2826 = vmatpush3.bf16.msra.mxu0 %v2825_v26  ;;  %v527_v26 = vld [vmem:[%s4647_s1 + $0xfc0] sm:$0xff]  ;;  %v530_v38 = vld [vmem:[%s4647_s1 + $0xfd8] sm:$0xff]  ;;  %v532_v54 = vld [vmem:[%s4647_s1 + $0xfe8] sm:$0xff] }
  0xde   :  { %2828 = vmatprep.subr.bf16.mxu0 %v2827_v29  ;;  %v2909_v29 = vpack.c.bf16 %v510_v23, %v509_v21  ;;  %v2911_v34 = vpack.c.bf16 %v528_v27, %v527_v26  ;;  %v482_v44 = vld [vmem:[%s4647_s1 + $0xe58] sm:$0xff]  ;;  %v531_v53 = vld [vmem:[%s4647_s1 + $0xfe0] sm:$0xff]  ;;  %v484_v58 = vld [vmem:[%s4647_s1 + $0xe68] sm:$0xff] }
  0xdf   :  { %2858 = vmatpush3.bf16.msra.mxu1 %v2857_v28  ;;  %v2877_v28 = vpack.c.bf16 %v478_v20, %v477_v19  ;;  %v514_v48 = vld [vmem:[%s4647_s1 + $0xf58] sm:$0xff]  ;;  %v483_v45 = vld [vmem:[%s4647_s1 + $0xe60] sm:$0xff]  ;;  %v2919_v60 = vpack.c.bf16 %v532_v54, %v531_v53  ;;  %v516_v61 = vld [vmem:[%s4647_s1 + $0xf68] sm:$0xff] }
  0xe0   :  { %2860 = vmatprep.subr.bf16.mxu1 %v2859_v42  ;;  %v511_v42 = vld [vmem:[%s4647_s1 + $0xf40] sm:$0xff]  ;;  %v501_v62 = vld [vmem:[%s4647_s1 + $0xef0] sm:$0xff]  ;;  %v486_v12 = vld [vmem:[%s4647_s1 + $0xe78] sm:$0xff] }
  0xe1   :  { %2830 = vmatpush3.bf16.msra.mxu0 %v2829_v39  ;;  %v2881_v39 = vpack.c.bf16 %v480_v32, %v479_v30  ;;  %v515_v59 = vld [vmem:[%s4647_s1 + $0xf60] sm:$0xff]  ;;  %v485_v11 = vld [vmem:[%s4647_s1 + $0xe70] sm:$0xff] }
  0xe2   :  { %2864 = vmatprep.subr.bf16.mxu0 %v2863_v41  ;;  %v2883_v41 = vpack.c.bf16 %v498_v52, %v497_v36  ;;  %v1854_v0 = vld [vmem:[%s4648_s2] ss:$0 sm:$0xff]  ;;  %v2893_v19 = vpack.c.bf16 %v486_v12, %v485_v11 }
  0xe3   :  { %2862 = vmatpush3.bf16.msra.mxu1 %v2861_v40  ;;  %v2913_v40 = vpack.c.bf16 %v512_v35, %v511_v42 }
  0xe4   :  { %2896 = vmatprep.subr.bf16.mxu1 %v2895_v47  ;;  %1623 = vmatmul.mubr.f32.vlgmr.msra.gmra.mrb[12].mxu0 %v4249_v8  ;;  %v475_v8 = vld [vmem:[%s4647_s1 + $0xe20] sm:$0xff]  ;;  %v2915_v47 = vpack.c.bf16 %v530_v38, %v529_v37 }
  0xe5   :  { %2866 = vmatpush3.bf16.msra.mxu0 %v2865_v55  ;;  %1762 = vmatprep.mubr.f32.mxu0 %v684_v63  ;;  %v2873_v16 = vpack.c.bf16 %v476_v6, %v475_v8  ;;  %v2885_v55 = vpack.c.bf16 %v482_v44, %v481_v43  ;;  %v502_v63 = vld [vmem:[%s4647_s1 + $0xef8] sm:$0xff]  ;;  %v2889_v6 = vpack.c.bf16 %v484_v58, %v483_v45 }
  0xe6   :  { %1693 = vmatmul.mubr.f32.vlgmr.msra.gmra.mrb[12].mxu1 %v4258_v10  ;;  %2868 = vmatprep.subr.bf16.mxu0 %v2867_v57  ;;  %v508_v10 = vld [vmem:[%s4647_s1 + $0xf28] sm:$0xff]  ;;  %v2887_v57 = vpack.c.bf16 %v500_v50, %v499_v49 }
  0xe7   :  { %2898 = vmatpush3.bf16.msra.mxu1 %v2897_v56  ;;  %1832 = vmatprep.mubr.f32.mxu1 %v685_v2  ;;  %v2905_v17 = vpack.c.bf16 %v508_v10, %v507_v7  ;;  %v2917_v56 = vpack.c.bf16 %v514_v48, %v513_v46  ;;  %v2891_v10 = vpack.c.bf16 %v502_v63, %v501_v62 }
  0xe8   :  { %2900 = vmatprep.subr.bf16.mxu1 %v2899_v13 }
  0xe9   :  { %2870 = vmatpush3.bf16.msra.mxu0 %v2869_v3  ;;  %v533_v3 = vld [vmem:[%s4647_s1 + $0xff0] sm:$0xff] }
  0xea   :  { %2872 = vmatprep.subr.bf16.mxu0 %v2871_v5 }
  0xeb   :  { %2902 = vmatpush3.bf16.msra.mxu1 %v2901_v4  ;;  %v534_v4 = vld [vmem:[%s4647_s1 + $0xff8] sm:$0xff] }
  0xec   :  { %2904 = vmatprep.subr.bf16.mxu1 %v2903_v9  ;;  %v2921_v9 = vpack.c.bf16 %v516_v61, %v515_v59  ;;  %v2923_v15 = vpack.c.bf16 %v534_v4, %v533_v3 }
  0xed   :  { %2874 = vmatpush3.bf16.msra.mxu0 %v2873_v16  ;;  %v517_v16 = vld [vmem:[%s4647_s1 + $0xf70] sm:$0xff] }
  0xee   :  { %2876 = vmatprep.subr.bf16.mxu0 %v2875_v18 }
  0xef   :  { %2906 = vmatpush3.bf16.msra.mxu1 %v2905_v17  ;;  %v518_v17 = vld [vmem:[%s4647_s1 + $0xf78] sm:$0xff]  ;;  %s2962_s1 = smov [#allocation2]  }
  0xf0   :  { %2908 = vmatprep.subr.bf16.mxu1 %v2907_v22  ;;  %v2925_v20 = vpack.c.bf16 %v518_v17, %v517_v16  ;;  %s1846_s22 = sshll.u32 %s2962_s1, 4  ;;  %s1847_s22 = int_to_ptr.vmem [resolvable:$true] %s1846_s22 }
  0xf1   :  { %2878 = vmatpush3.bf16.msra.mxu0 %v2877_v28  ;;  %s2937_s23 = scalar_lea.vmem %s1847_s22, 32  ;;  %p2942_p1 = scmp.lt.s32.totalorder %s1847_s22, %s1847_s22 }
  0xf2   :  { %2880 = vmatprep.subr.bf16.mxu0 %v2879_v31  ;;  %p2938_p0 = scmp.ne.s32.totalorder %s1847_s22, %s2937_s23  ;;  %p2943_p2 = scmp.lt.s32.totalorder %s2937_s23, %s2937_s23 }
  0xf3   :  { %2910 = vmatpush3.bf16.msra.mxu1 %v2909_v29 }
  0xf4   :  { %2912 = vmatprep.subr.bf16.mxu1 %v2911_v34  ;;  %p2944_p3 = por %p2943_p2, %p2942_p1 }
  0xf5   :  { %2882 = vmatpush3.bf16.msra.mxu0 %v2881_v39 }
  0xf6   :  { %2884 = vmatprep.subr.bf16.mxu0 %v2883_v41  ;;  %p2945_p4 = pnand %p2944_p3, %p2938_p0 }
  0xf7   :  { %2914 = vmatpush3.bf16.msra.mxu1 %v2913_v40  ;;  %v1887_v13 = vpop.f32.mrb[0].mxu0 }
  0xf8   :  { %2916 = vmatprep.subr.bf16.mxu1 %v2915_v47  ;;  %v1888_v1 = vpop.f32.mrb[1].mxu0 }
  0xf9   :  { %v1922_v2 = vpop.f32.mrb[0].mxu1  ;;  %v1889_v5 = vadd.f32 %v1888_v1, %v1887_v13  ;;  %2886 = vmatpush3.bf16.msra.mxu0 %v2885_v55 }
  0xfa   :  { %v1923_v8 = vpop.f32.mrb[1].mxu1  ;;  %2888 = vmatprep.subr.bf16.mxu0 %v2887_v57 }
  0xfb   :  { %v1924_v7 = vadd.f32 %v1923_v8, %v1922_v2  ;;  %2918 = vmatpush3.bf16.msra.mxu1 %v2917_v56  ;;  %v785_v14 = vadd.f32 %v1889_v5, %v1854_v0 }
  0xfc   :  { %2920 = vmatprep.subr.bf16.mxu1 %v2919_v60 }
  0xfd   :  { %v855_v18 = vadd.f32 %v1924_v7, %v785_v14  ;;  %2890 = vmatpush3.bf16.msra.mxu0 %v2889_v6 }
  0xfe   :  { %2892 = vmatprep.subr.bf16.mxu0 %v2891_v10 }
  0xff   :  { %2922 = vmatpush3.bf16.msra.mxu1 %v2921_v9 }
 0x100   :  { %2924 = vmatprep.subr.bf16.mxu1 %v2923_v15 }
 0x101   :  { %2894 = vmatpush3.bf16.msra.mxu0 %v2893_v19 }
 0x103   :  { %2926 = vmatpush3.bf16.msra.mxu1 %v2925_v20 }
 0x104   :  { %1763 = vmatmul.mubr.f32.vlgmr.msra.gmra.mrb[14].mxu0 %v4456_v51 }
 0x106   :  { %1833 = vmatmul.mubr.f32.vlgmr.msra.gmra.mrb[14].mxu1 %v4465_v33 }
 0x117   :  { %v1957_v21 = vpop.f32.mrb[2].mxu0 }
 0x118   :  { %v1958_v22 = vpop.f32.mrb[3].mxu0 }
 0x119   :  { %v1992_v23 = vpop.f32.mrb[2].mxu1  ;;  %v1959_v24 = vadd.f32 %v1958_v22, %v1957_v21 }
 0x11a   :  { %v1993_v25 = vpop.f32.mrb[3].mxu1 }
 0x11b   :  { %v1994_v26 = vadd.f32 %v1993_v25, %v1992_v23  ;;  %v925_v27 = vadd.f32 %v1959_v24, %v855_v18 }
 0x11d   :  { %v995_v28 = vadd.f32 %v1994_v26, %v925_v27 }
 0x137   :  { %v2027_v29 = vpop.f32.mrb[4].mxu0 }
 0x138   :  { %v2028_v31 = vpop.f32.mrb[5].mxu0 }
 0x139   :  { %v2062_v30 = vpop.f32.mrb[4].mxu1  ;;  %v2029_v32 = vadd.f32 %v2028_v31, %v2027_v29 }
 0x13a   :  { %v2063_v42 = vpop.f32.mrb[5].mxu1 }
 0x13b   :  { %v2064_v34 = vadd.f32 %v2063_v42, %v2062_v30  ;;  %v1065_v35 = vadd.f32 %v2029_v32, %v995_v28 }
 0x13d   :  { %v1135_v36 = vadd.f32 %v2064_v34, %v1065_v35 }
 0x157   :  { %v2097_v52 = vpop.f32.mrb[6].mxu0 }
 0x158   :  { %v2098_v51 = vpop.f32.mrb[7].mxu0 }
 0x159   :  { %v2132_v37 = vpop.f32.mrb[6].mxu1  ;;  %v2099_v33 = vadd.f32 %v2098_v51, %v2097_v52 }
 0x15a   :  { %v2133_v38 = vpop.f32.mrb[7].mxu1 }
 0x15b   :  { %v2134_v39 = vadd.f32 %v2133_v38, %v2132_v37  ;;  %v1205_v40 = vadd.f32 %v2099_v33, %v1135_v36 }
 0x15d   :  { %v1275_v41 = vadd.f32 %v2134_v39, %v1205_v40 }
 0x177   :  { %v2167_v43 = vpop.f32.mrb[8].mxu0 }
 0x178   :  { %v2168_v44 = vpop.f32.mrb[9].mxu0 }
 0x179   :  { %v2202_v46 = vpop.f32.mrb[8].mxu1  ;;  %v2169_v47 = vadd.f32 %v2168_v44, %v2167_v43 }
 0x17a   :  { %v2203_v48 = vpop.f32.mrb[9].mxu1 }
 0x17b   :  { %v2204_v49 = vadd.f32 %v2203_v48, %v2202_v46  ;;  %v1345_v50 = vadd.f32 %v2169_v47, %v1275_v41 }
 0x17d   :  { %v1415_v53 = vadd.f32 %v2204_v49, %v1345_v50 }
 0x197   :  { %v2237_v54 = vpop.f32.mrb[10].mxu0 }
 0x198   :  { %v2238_v55 = vpop.f32.mrb[11].mxu0 }
 0x199   :  { %v2272_v56 = vpop.f32.mrb[10].mxu1  ;;  %v2239_v57 = vadd.f32 %v2238_v55, %v2237_v54 }
 0x19a   :  { %v2273_v45 = vpop.f32.mrb[11].mxu1 }
 0x19b   :  { %v2274_v58 = vadd.f32 %v2273_v45, %v2272_v56  ;;  %v1485_v59 = vadd.f32 %v2239_v57, %v1415_v53 }
 0x19d   :  { %v1555_v13 = vadd.f32 %v2274_v58, %v1485_v59 }
 0x1b7   :  { %v2307_v60 = vpop.f32.mrb[12].mxu0 }
 0x1b8   :  { %v2308_v61 = vpop.f32.mrb[13].mxu0 }
 0x1b9   :  { %v2342_v62 = vpop.f32.mrb[12].mxu1  ;;  %v2309_v63 = vadd.f32 %v2308_v61, %v2307_v60 }
 0x1ba   :  { %v2343_v0 = vpop.f32.mrb[13].mxu1 }
 0x1bb   :  { %v2344_v1 = vadd.f32 %v2343_v0, %v2342_v62  ;;  %v1625_v2 = vadd.f32 %v2309_v63, %v1555_v13 }
 0x1bd   :  { %v1695_v3 = vadd.f32 %v2344_v1, %v1625_v2 }
 0x1d7   :  { %v2377_v4 = vpop.f32.mrb[14].mxu0 }
 0x1d8   :  { %v2378_v5 = vpop.f32.mrb[15].mxu0 }
 0x1d9   :  { %v2412_v8 = vpop.f32.mrb[14].mxu1  ;;  %v2379_v6 = vadd.f32 %v2378_v5, %v2377_v4 }
 0x1da   :  { %v2413_v7 = vpop.f32.mrb[15].mxu1 }
 0x1db   :  { %v2414_v9 = vadd.f32 %v2413_v7, %v2412_v8  ;;  %v1765_v10 = vadd.f32 %v2379_v6, %v1695_v3 }
 0x1dd   :  { %v1835_v11 = vadd.f32 %v2414_v9, %v1765_v10 }
 0x1df   :  { %1839 = vst.msk [vmem:[#allocation2] sm:$0x3] %vm1838_vm0, %v1835_v11 }
 0x1e0   :  { %2948 = shalt.err (!%p2945_p4)
}
 0x1e1   :  { %s2949_s26 = scalar_lea.hbm %s4649_s3, 32 }
 0x1e2   :  { %p2950_p5 = scmp.ne.s32.totalorder %s4649_s3, %s2949_s26  ;;  %p2953_p6 = scmp.lt.u32.totalorder %s2949_s26, %s4649_s3 }
 0x1e4   :  { %p2955_p7 = pnand %p2953_p6, %p2950_p5 }
 0x1e6   :  { %2958 = shalt.err (!%p2955_p7)
}
 0x1e7   :  { %1849 = dma.vmem_to_hbm [thread:$0]  %s1847_s22, 32, %s4649_s3, [#allocation3]  }
 0x1e8   :  { %2959 = dma.done.wait [#allocation3], 32  }
 0x1e9   :  { %2960 = vsyncadd [#allocation3], 4294967264 }
 0x1ea   :  { %1853 = vsyncpa [#allocation3], 1 }

</bundles_post_ra>
